<compile_context>
chip_gen: v7x
topology: tpu7x:2x2x1
jax: 0.10.0
libtpu: 0.0.40
codegen_flags: <defaults>
</compile_context>

<pallas_src>
import functools

import jax
import jax.numpy as jnp
from jax.experimental import pallas as pl
from jax.experimental.pallas import tpu as pltpu


def _round_up(x, m):
    return ((x + m - 1) // m) * m


# ---------------------------------------------------------------------------
# Fused layer kernel:
#   [optional prologue]  t = leaky(x * scale + shift)   (previous BN + LeakyReLU,
#                        with the conv zero-padding tap segments forced to 0)
#   acc = t @ W + b                                      (single MXU push / tile)
#   [optional stats]     per-tile column sum / sum-of-squares of acc
#   [optional second]    acc = acc @ W2 + b2             (TimeDistributed Linear)
# ---------------------------------------------------------------------------
def _fused_layer_kernel(*refs, tm, m_real, cin, n_taps, seq_len, slope,
                        has_prologue, emit_stats, has_second, compute_dtype):
    it = iter(refs)
    x_ref = next(it)
    if has_prologue:
        scale_ref = next(it)
        shift_ref = next(it)
    w_ref = next(it)
    b_ref = next(it)
    if has_second:
        w2_ref = next(it)
        b2_ref = next(it)
    o_ref = next(it)
    stats_ref = next(it) if emit_stats else None

    row0 = pl.program_id(0) * tm
    x = x_ref[...]

    if has_prologue:
        # Previous layer's BatchNorm affine + LeakyReLU, applied per folded
        # column (scale/shift are the per-channel vectors tiled over the taps).
        t = x.astype(jnp.float32) * scale_ref[...] + shift_ref[...]
        t = jnp.where(t >= 0, t, slope * t)
        # The conv "same" zero-padding rows live in the tap-0 segment of rows
        # with l == 0 and the tap-(last) segment of rows with l == seq_len-1.
        # They must stay exactly zero (PyTorch pads AFTER BN+LeakyReLU); the
        # affine above would otherwise turn them into leaky(shift).
        # Row -> position-in-sequence via f32 floor-div (avoids integer vector
        # div/rem lowering).
        rows = row0 + jax.lax.broadcasted_iota(jnp.int32, t.shape, 0)
        rowf = rows.astype(jnp.float32)
        lpos = rowf - jnp.floor(rowf / float(seq_len)) * float(seq_len)
        cols = jax.lax.broadcasted_iota(jnp.int32, t.shape, 1)
        kill = ((lpos < 0.5) & (cols < cin)) | (
            (lpos > seq_len - 1.5)
            & (cols >= (n_taps - 1) * cin) & (cols < n_taps * cin))
        t = jnp.where(kill, 0.0, t)
        xin = t.astype(compute_dtype)
    else:
        xin = x.astype(compute_dtype)

    acc = jnp.dot(xin, w_ref[...], preferred_element_type=jnp.float32) + b_ref[...]

    if emit_stats:
        # Per-tile partial sums for the NEXT layer's BatchNorm statistics,
        # excluding the M_pad - M zero-padded rows.
        rows = row0 + jax.lax.broadcasted_iota(jnp.int32, acc.shape, 0)
        yv = jnp.where(rows < m_real, acc, 0.0)
        s1 = jnp.sum(yv, axis=0, keepdims=True)          # (1, N_pad)
        s2 = jnp.sum(yv * yv, axis=0, keepdims=True)     # (1, N_pad)
        srow = jax.lax.broadcasted_iota(jnp.int32, stats_ref.shape, 1)
        stats_ref[...] = jnp.where(srow == 0, s1[None],
                                   jnp.where(srow == 1, s2[None], 0.0))

    if has_second:
        acc = jnp.dot(acc.astype(compute_dtype), w2_ref[...],
                      preferred_element_type=jnp.float32) + b2_ref[...]

    o_ref[...] = acc.astype(o_ref.dtype)


def fused_layer(x2d, w, b, *, seq_len, cin, n_taps=3, prologue=None, second=None,
                emit_stats=False, out_dtype=jnp.bfloat16,
                compute_dtype=jnp.bfloat16, slope=0.2, tm_max=512):
    """One CAE layer as a single Pallas call.

    x2d      : (M, K) folded-tap input (K = n_taps*cin for the convs).
    w, b     : (K, N) folded weights and (N,) bias.
    prologue : optional (scale, shift), each (K,) f32 — previous BatchNorm
               affine + LeakyReLU applied in-kernel before the matmul.
    second   : optional (W2 (N, N2), b2 (N2,)) chained matmul (fc fusion).
    emit_stats: also return per-tile (sum, sum_sq) of the (M, N) result.
    """
    M, K = x2d.shape
    N = w.shape[1]
    K_pad = _round_up(K, 128)            # lane-dense contraction dim
    N_pad = _round_up(N, 128)            # lane-dense output -> unmasked stores
    # Large M tile (amortizes ~0.35us per-grid-step overhead), multiple of 16
    # for bf16 sublane packing.  No forced >=2-step split: on 1-TC chips a
    # single large tile is strictly better; large M still yields many steps.
    tm = int(min(tm_max, _round_up(M, 16)))
    M_pad = _round_up(M, tm)
    grid = M_pad // tm

    in_item = jnp.dtype(compute_dtype).itemsize
    out_item = jnp.dtype(out_dtype).itemsize

    x_p = jnp.pad(x2d.astype(compute_dtype), ((0, M_pad - M), (0, K_pad - K)))
    w_p = jnp.pad(w.astype(compute_dtype), ((0, K_pad - K), (0, N_pad - N)))
    b_p = jnp.pad(b.astype(jnp.float32), (0, N_pad - N)).reshape(1, N_pad)

    operands = [x_p]
    in_specs = [pl.BlockSpec((tm, K_pad), lambda i: (i, 0))]
    if prologue is not None:
        scale, shift = prologue
        operands += [
            jnp.pad(scale.astype(jnp.float32), (0, K_pad - K)).reshape(1, K_pad),
            jnp.pad(shift.astype(jnp.float32), (0, K_pad - K)).reshape(1, K_pad)]
        in_specs += [pl.BlockSpec((1, K_pad), lambda i: (0, 0)),
                     pl.BlockSpec((1, K_pad), lambda i: (0, 0))]
    operands += [w_p, b_p]
    in_specs += [pl.BlockSpec((K_pad, N_pad), lambda i: (0, 0)),
                 pl.BlockSpec((1, N_pad), lambda i: (0, 0))]

    n2 = None
    if second is not None:
        w2, b2 = second
        n2 = w2.shape[1]
        n2_pad = _round_up(n2, 128)
        operands += [
            jnp.pad(w2.astype(compute_dtype), ((0, N_pad - N), (0, n2_pad - n2))),
            jnp.pad(b2.astype(jnp.float32), (0, n2_pad - n2)).reshape(1, n2_pad)]
        in_specs += [pl.BlockSpec((N_pad, n2_pad), lambda i: (0, 0)),
                     pl.BlockSpec((1, n2_pad), lambda i: (0, 0))]
        n_out_pad = n2_pad
    else:
        n_out_pad = N_pad

    out_shapes = (jax.ShapeDtypeStruct((M_pad, n_out_pad), out_dtype),)
    out_specs = (pl.BlockSpec((tm, n_out_pad), lambda i: (i, 0)),)
    if emit_stats:
        out_shapes += (jax.ShapeDtypeStruct((grid, 8, N_pad), jnp.float32),)
        out_specs += (pl.BlockSpec((1, 8, N_pad), lambda i: (i, 0, 0)),)

    kernel = functools.partial(
        _fused_layer_kernel, tm=tm, m_real=M, cin=cin, n_taps=n_taps,
        seq_len=seq_len, slope=slope, has_prologue=prologue is not None,
        emit_stats=emit_stats, has_second=second is not None,
        compute_dtype=compute_dtype)

    # FLOPs / bytes from the real (unpadded, folded-tap) dims.
    flops = 2 * M * K * N + (2 * M * N * n2 if second is not None else 0)
    bytes_accessed = (M * K * in_item + K * N * in_item + N * 4
                      + M * (n2 if second is not None else N) * out_item
                      + (2 * K * 4 if prologue is not None else 0)
                      + (grid * 8 * N_pad * 4 if emit_stats else 0)
                      + (N * n2 * in_item + n2 * 4 if second is not None else 0))
    cost = pl.CostEstimate(flops=int(flops), transcendentals=0,
                           bytes_accessed=int(bytes_accessed))

    # VMEM: double-buffered x / y blocks + resident weight/bias/prologue blocks
    # (also double-buffered by the pipeliner) + stats block.  Tiny at these
    # sizes; generous headroom, capped at the 32 MiB scoped default (v7x-safe).
    vmem_est = (2 * tm * K_pad * in_item + 2 * K_pad * N_pad * in_item
                + 2 * tm * n_out_pad * out_item + 2 * 8 * N_pad * 4
                + 4 * K_pad * 4 + 2 * N_pad * 4
                + (2 * N_pad * n_out_pad * in_item + 2 * n_out_pad * 4
                   if second is not None else 0))
    vmem_limit = int(min(max(4 * vmem_est, 16 * 1024 * 1024), 32 * 1024 * 1024))

    outs = pl.pallas_call(
        kernel,
        out_shape=out_shapes,
        grid_spec=pl.GridSpec(grid=(grid,), in_specs=in_specs,
                              out_specs=out_specs),
        compiler_params=pltpu.CompilerParams(
            dimension_semantics=("parallel",),
            vmem_limit_bytes=vmem_limit),
        cost_estimate=cost,
    )(*operands)
    y = outs[0]
    stats = outs[1] if emit_stats else None
    return y, stats


# ---------------------------------------------------------------------------
# Layer plumbing: tap folding, weight folding, BN scale/shift from stats
# ---------------------------------------------------------------------------
def _fold_taps(x_blc):
    """(B, L, C) -> (B*L, 3*C) shifted windows concatenated along channels."""
    B, L, C = x_blc.shape
    xp = jnp.pad(x_blc, ((0, 0), (1, 1), (0, 0)))
    return jnp.concatenate([xp[:, k:k + L, :] for k in range(3)],
                           axis=-1).reshape(B * L, 3 * C)


def _fold_conv_weight(w):
    """PyTorch Conv1d weight (Cout, Cin, 3) -> folded (3*Cin, Cout)."""
    return jnp.transpose(w, (2, 1, 0)).reshape(-1, w.shape[0])


def _fold_convT_weight(w):
    """PyTorch ConvTranspose1d weight (Cin, Cout, 3) -> folded (3*Cin, Cout).
    stride-1/padding-1 convT == conv with flipped kernel, swapped channels."""
    return _fold_conv_weight(jnp.flip(w, axis=2).transpose(1, 0, 2))


def _bn_scale_shift(stats, n_rows, gamma, beta, eps):
    """Fold per-tile (sum, sum_sq) into the BN affine: y*scale + shift.
    Training-mode batch statistics with biased variance (PyTorch forward)."""
    c = gamma.shape[0]
    s1 = jnp.sum(stats[:, 0, :c], axis=0)
    s2 = jnp.sum(stats[:, 1, :c], axis=0)
    mean = s1 / n_rows
    var = jnp.maximum(s2 / n_rows - mean * mean, 0.0)
    scale = gamma * jax.lax.rsqrt(var + eps)
    shift = beta - mean * scale
    return scale, shift


# ---------------------------------------------------------------------------
# CAE forward
# ---------------------------------------------------------------------------
def cae_forward(x, params, *, compute_dtype=jnp.bfloat16, eps=1e-5, slope=0.2,
                tm_max=512):
    """x: (B, seq_len, vec_len) f32 -> (B, seq_len, vec_len) f32.

    Channels-last throughout, so both PyTorch permute(0, 2, 1) calls become
    layout no-ops.  5 pallas_calls total: each conv/convT kernel fuses the
    previous BN+LeakyReLU as a prologue and emits BN statistics for the next
    layer; the last kernel also chains the TimeDistributed Linear."""
    B, L, vec_len = x.shape
    M = B * L
    hid = params["enc1_w"].shape[0]
    h2 = params["enc2_w"].shape[0]
    h4 = params["enc3_w"].shape[0]

    def tile3(v):
        return jnp.tile(v, 3)

    common = dict(seq_len=L, compute_dtype=compute_dtype, slope=slope,
                  tm_max=tm_max)

    # ----- encoder -----
    y1, st1 = fused_layer(_fold_taps(x), _fold_conv_weight(params["enc1_w"]),
                          params["enc1_b"], cin=vec_len, emit_stats=True,
                          out_dtype=compute_dtype, **common)
    sc1, sh1 = _bn_scale_shift(st1, M, params["bn1_g"], params["bn1_b"], eps)

    f1 = _fold_taps(y1[:M, :hid].reshape(B, L, hid))
    y2, st2 = fused_layer(f1, _fold_conv_weight(params["enc2_w"]),
                          params["enc2_b"], cin=hid,
                          prologue=(tile3(sc1), tile3(sh1)), emit_stats=True,
                          out_dtype=compute_dtype, **common)
    sc2, sh2 = _bn_scale_shift(st2, M, params["bn2_g"], params["bn2_b"], eps)

    f2 = _fold_taps(y2[:M, :h2].reshape(B, L, h2))
    y3, st3 = fused_layer(f2, _fold_conv_weight(params["enc3_w"]),
                          params["enc3_b"], cin=h2,
                          prologue=(tile3(sc2), tile3(sh2)), emit_stats=True,
                          out_dtype=compute_dtype, **common)
    sc3, sh3 = _bn_scale_shift(st3, M, params["bn3_g"], params["bn3_b"], eps)

    # ----- decoder -----
    f3 = _fold_taps(y3[:M, :h4].reshape(B, L, h4))
    y4, st4 = fused_layer(f3, _fold_convT_weight(params["dec1_w"]),
                          params["dec1_b"], cin=h4,
                          prologue=(tile3(sc3), tile3(sh3)), emit_stats=True,
                          out_dtype=compute_dtype, **common)
    sc4, sh4 = _bn_scale_shift(st4, M, params["bn4_g"], params["bn4_b"], eps)

    # dec2 ConvTranspose + TimeDistributed(Linear) fused into one kernel.
    f4 = _fold_taps(y4[:M, :h2].reshape(B, L, h2))
    y5, _ = fused_layer(f4, _fold_convT_weight(params["dec2_w"]),
                        params["dec2_b"], cin=h2,
                        prologue=(tile3(sc4), tile3(sh4)),
                        second=(params["fc_w"].T, params["fc_b"]),
                        emit_stats=False, out_dtype=jnp.float32, **common)
    # TODO(synk): eval-mode BatchNorm (running_mean/running_var) is not
    # implemented; this mirrors the default training-mode PyTorch forward.
    return y5[:M, :vec_len].reshape(B, L, vec_len)


# ---------------------------------------------------------------------------
# Pure-JAX f32 reference (mirrors the PyTorch forward)
# ---------------------------------------------------------------------------
def _ref_leaky(t, slope=0.2):
    return jnp.where(t >= 0, t, slope * t)


def _ref_conv1d(x, w, b):
    L = x.shape[1]
    pad = (w.shape[2] - 1) // 2
    xp = jnp.pad(x, ((0, 0), (pad, pad), (0, 0)))
    y = sum(jnp.einsum("blc,oc->blo", xp[:, k:k + L, :], w[:, :, k],
                       precision=jax.lax.Precision.HIGHEST)
            for k in range(w.shape[2]))
    return y + b


def _ref_convT1d(x, w, b):
    return _ref_conv1d(x, jnp.flip(w, axis=2).transpose(1, 0, 2), b)


def _ref_bn_lrelu(x, g, bt, eps=1e-5, slope=0.2):
    x2 = x.reshape(-1, x.shape[-1])
    m, v = x2.mean(axis=0), x2.var(axis=0)
    return _ref_leaky((x - m) * (g * jax.lax.rsqrt(v + eps)) + bt, slope)


def cae_reference(x, p):
    h = x
    h = _ref_bn_lrelu(_ref_conv1d(h, p["enc1_w"], p["enc1_b"]), p["bn1_g"], p["bn1_b"])
    h = _ref_bn_lrelu(_ref_conv1d(h, p["enc2_w"], p["enc2_b"]), p["bn2_g"], p["bn2_b"])
    h = _ref_bn_lrelu(_ref_conv1d(h, p["enc3_w"], p["enc3_b"]), p["bn3_g"], p["bn3_b"])
    h = _ref_bn_lrelu(_ref_convT1d(h, p["dec1_w"], p["dec1_b"]), p["bn4_g"], p["bn4_b"])
    h = _ref_convT1d(h, p["dec2_w"], p["dec2_b"])
    y = jnp.einsum("mk,ok->mo", h.reshape(-1, h.shape[-1]), p["fc_w"],
                   precision=jax.lax.Precision.HIGHEST) + p["fc_b"]
    return y.reshape(h.shape[0], -1, p["fc_w"].shape[0])


if __name__ == "__main__":
    B, SEQ, VEC, HID = 2, 16, 4, 32            # small demo shapes (hidden_size=32)
    H2, H4 = HID // 2, HID // 4

    key = jax.random.PRNGKey(0)
    ks = jax.random.split(key, 21)

    def u(k, shape, fan_in):
        bound = 1.0 / (fan_in ** 0.5)
        return jax.random.uniform(k, shape, jnp.float32, -bound, bound)

    params = {
        # encoder: Conv1d weights (Cout, Cin, 3)
        "enc1_w": u(ks[0], (HID, VEC, 3), VEC * 3), "enc1_b": u(ks[1], (HID,), VEC * 3),
        "bn1_g": 1.0 + 0.1 * jax.random.normal(ks[2], (HID,), jnp.float32),
        "bn1_b": 0.1 * jax.random.normal(ks[3], (HID,), jnp.float32),
        "enc2_w": u(ks[4], (H2, HID, 3), HID * 3), "enc2_b": u(ks[5], (H2,), HID * 3),
        "bn2_g": 1.0 + 0.1 * jax.random.normal(ks[6], (H2,), jnp.float32),
        "bn2_b": 0.1 * jax.random.normal(ks[7], (H2,), jnp.float32),
        "enc3_w": u(ks[8], (H4, H2, 3), H2 * 3), "enc3_b": u(ks[9], (H4,), H2 * 3),
        "bn3_g": 1.0 + 0.1 * jax.random.normal(ks[10], (H4,), jnp.float32),
        "bn3_b": 0.1 * jax.random.normal(ks[11], (H4,), jnp.float32),
        # decoder: ConvTranspose1d weights (Cin, Cout, 3)
        "dec1_w": u(ks[12], (H4, H2, 3), H4 * 3), "dec1_b": u(ks[13], (H2,), H4 * 3),
        "bn4_g": 1.0 + 0.1 * jax.random.normal(ks[14], (H2,), jnp.float32),
        "bn4_b": 0.1 * jax.random.normal(ks[15], (H2,), jnp.float32),
        "dec2_w": u(ks[16], (H2, HID, 3), H2 * 3), "dec2_b": u(ks[17], (HID,), H2 * 3),
        # fc: Linear weight (out_f=vec_len, in_f=hidden)
        "fc_w": u(ks[18], (VEC, HID), HID), "fc_b": u(ks[19], (VEC,), HID),
    }
    x = jax.random.normal(ks[20], (B, SEQ, VEC), jnp.float32)

    y_ref = cae_reference(x, params)

    # default path: bf16 matmuls / bf16 intermediates, f32 accumulation
    y = jax.block_until_ready(jax.jit(cae_forward)(x, params))
    assert y.shape == (B, SEQ, VEC), y.shape
    err = jnp.abs(y - y_ref)
    max_err, mean_err = float(jnp.max(err)), float(jnp.mean(err))
    assert max_err < 0.15, f"max_err={max_err}"
    assert mean_err < 0.03, f"mean_err={mean_err}"

    # f32 compute path (same kernels, dtype knob), tighter check
    y32 = jax.block_until_ready(
        jax.jit(functools.partial(cae_forward, compute_dtype=jnp.float32))(x, params))
    err32 = jnp.abs(y32 - y_ref)
    assert float(jnp.max(err32)) < 0.02, float(jnp.max(err32))

    print("KERNEL_OK")
</pallas_src>

<mosaic_0001>
module attributes {stable_mosaic.version = 11 : i64} {
  func.func @_fused_layer_kernel(%arg0: i32, %arg1: memref<32x128xbf16, #tpu.memory_space<vmem>>, %arg2: memref<128x128xbf16, #tpu.memory_space<vmem>>, %arg3: memref<1x128xf32, #tpu.memory_space<vmem>>, %arg4: memref<32x128xbf16, #tpu.memory_space<vmem>>, %arg5: memref<1x8x128xf32, #tpu.memory_space<vmem>>) attributes {dimension_semantics = [#tpu.dimension_semantics<parallel>], iteration_bounds = array<i64: 1>, scalar_prefetch = 0 : i64, scratch_operands = 0 : i64, tpu.core_type = #tpu.core_type<tc>, window_params = [{transform_indices = @transform_0, window_bounds = array<i64: 32, 128>}, {pipeline_mode = #tpu.pipeline_mode<synchronous>, transform_indices = @transform_1, window_bounds = array<i64: 128, 128>}, {pipeline_mode = #tpu.pipeline_mode<synchronous>, transform_indices = @transform_2, window_bounds = array<i64: 1, 128>}, {transform_indices = @transform_3, window_bounds = array<i64: 32, 128>}, {transform_indices = @transform_4, window_bounds = array<i64: 1, 8, 128>}]} {
    %c32_i32 = arith.constant 32 : i32
    %0 = arith.muli %arg0, %c32_i32 : i32
    %c0 = arith.constant 0 : index
    %c0_0 = arith.constant 0 : index
    %1 = vector.load %arg1[%c0, %c0_0] : memref<32x128xbf16, #tpu.memory_space<vmem>>, vector<32x128xbf16>
    %c0_1 = arith.constant 0 : index
    %c0_2 = arith.constant 0 : index
    %2 = vector.load %arg2[%c0_1, %c0_2] : memref<128x128xbf16, #tpu.memory_space<vmem>>, vector<128x128xbf16>
    %cst = arith.constant dense<0.000000e+00> : vector<32x128xf32>
    %3 = tpu.matmul %1, %2, %cst {dimension_numbers = #tpu.dot_dimension_numbers<[1], [0], [0], [1], [0, 0, 1, 1], [], []>} : vector<32x128xbf16>, vector<128x128xbf16>, vector<32x128xf32> -> vector<32x128xf32>
    %c0_3 = arith.constant 0 : index
    %c0_4 = arith.constant 0 : index
    %4 = vector.load %arg3[%c0_3, %c0_4] : memref<1x128xf32, #tpu.memory_space<vmem>>, vector<1x128xf32>
    %5 = vector.broadcast %4 : vector<1x128xf32> to vector<32x128xf32>
    %6 = arith.addf %3, %5 : vector<32x128xf32>
    %7 = tpu.iota {dimensions = array<i32: 0>} : vector<32x128xi32>
    %8 = vector.broadcast %0 : i32 to vector<32x128xi32>
    %9 = arith.addi %8, %7 : vector<32x128xi32>
    %c32_i32_5 = arith.constant 32 : i32
    %10 = vector.broadcast %c32_i32_5 : i32 to vector<32x128xi32>
    %11 = arith.cmpi slt, %9, %10 : vector<32x128xi32>
    %cst_6 = arith.constant 0.000000e+00 : f32
    %12 = vector.broadcast %cst_6 : f32 to vector<32x128xf32>
    %13 = arith.select %11, %6, %12 : vector<32x128xi1>, vector<32x128xf32>
    %cst_7 = arith.constant dense<0.000000e+00> : vector<128xf32>
    %14 = vector.multi_reduction <add>, %13, %cst_7 [0] : vector<32x128xf32> to vector<128xf32>
    %15 = vector.shape_cast %14 : vector<128xf32> to vector<1x128xf32>
    %16 = arith.mulf %13, %13 : vector<32x128xf32>
    %cst_8 = arith.constant dense<0.000000e+00> : vector<128xf32>
    %17 = vector.multi_reduction <add>, %16, %cst_8 [0] : vector<32x128xf32> to vector<128xf32>
    %18 = vector.shape_cast %17 : vector<128xf32> to vector<1x128xf32>
    %19 = tpu.iota {dimensions = array<i32: 1>} : vector<1x8x128xi32>
    %c0_i32 = arith.constant 0 : i32
    %20 = vector.broadcast %c0_i32 : i32 to vector<1x8x128xi32>
    %21 = arith.cmpi eq, %19, %20 : vector<1x8x128xi32>
    %22 = vector.shape_cast %15 : vector<1x128xf32> to vector<1x1x128xf32>
    %c1_i32 = arith.constant 1 : i32
    %23 = vector.broadcast %c1_i32 : i32 to vector<1x8x128xi32>
    %24 = arith.cmpi eq, %19, %23 : vector<1x8x128xi32>
    %25 = vector.shape_cast %18 : vector<1x128xf32> to vector<1x1x128xf32>
    %cst_9 = arith.constant 0.000000e+00 : f32
    %26 = vector.shape_cast %25 : vector<1x1x128xf32> to vector<1x1x128xf32>
    %27 = vector.broadcast %26 : vector<1x1x128xf32> to vector<1x8x128xf32>
    %28 = vector.broadcast %cst_9 : f32 to vector<1x8x128xf32>
    %29 = arith.select %24, %27, %28 : vector<1x8x128xi1>, vector<1x8x128xf32>
    %30 = vector.shape_cast %22 : vector<1x1x128xf32> to vector<1x1x128xf32>
    %31 = vector.broadcast %30 : vector<1x1x128xf32> to vector<1x8x128xf32>
    %32 = arith.select %21, %31, %29 : vector<1x8x128xi1>, vector<1x8x128xf32>
    %c0_10 = arith.constant 0 : index
    %c0_11 = arith.constant 0 : index
    %c0_12 = arith.constant 0 : index
    %33 = vector.load %arg5[%c0_10, %c0_11, %c0_12] : memref<1x8x128xf32, #tpu.memory_space<vmem>>, vector<1x8x128xf32>
    tpu.vector_store %arg5[%c0_10, %c0_11, %c0_12], %32 {strides = array<i32>} : memref<1x8x128xf32, #tpu.memory_space<vmem>>, vector<1x8x128xf32>,
    %34 = arith.truncf %6 : vector<32x128xf32> to vector<32x128xbf16>
    %c0_13 = arith.constant 0 : index
    %c0_14 = arith.constant 0 : index
    %35 = vector.load %arg4[%c0_13, %c0_14] : memref<32x128xbf16, #tpu.memory_space<vmem>>, vector<32x128xbf16>
    tpu.vector_store %arg4[%c0_13, %c0_14], %34 {strides = array<i32>} : memref<32x128xbf16, #tpu.memory_space<vmem>>, vector<32x128xbf16>,
    return
  }
  func.func @transform_0(%arg0: i32) -> (i32, i32) {
    %c0_i32 = arith.constant 0 : i32
    %c0_i32_0 = arith.constant 0 : i32
    return %arg0, %c0_i32 : i32, i32
  }
  func.func @transform_1(%arg0: i32) -> (i32, i32) {
    %c0_i32 = arith.constant 0 : i32
    %c0_i32_0 = arith.constant 0 : i32
    %c0_i32_1 = arith.constant 0 : i32
    return %c0_i32, %c0_i32_0 : i32, i32
  }
  func.func @transform_2(%arg0: i32) -> (i32, i32) {
    %c0_i32 = arith.constant 0 : i32
    %c0_i32_0 = arith.constant 0 : i32
    %c0_i32_1 = arith.constant 0 : i32
    return %c0_i32, %c0_i32_0 : i32, i32
  }
  func.func @transform_3(%arg0: i32) -> (i32, i32) {
    %c0_i32 = arith.constant 0 : i32
    %c0_i32_0 = arith.constant 0 : i32
    return %arg0, %c0_i32 : i32, i32
  }
  func.func @transform_4(%arg0: i32) -> (i32, i32, i32) {
    %c0_i32 = arith.constant 0 : i32
    %c0_i32_0 = arith.constant 0 : i32
    %c0_i32_1 = arith.constant 0 : i32
    return %arg0, %c0_i32, %c0_i32_0 : i32, i32, i32
  }
}

module attributes {stable_mosaic.version = 11 : i64} {
  func.func @_fused_layer_kernel(%arg0: i32, %arg1: memref<32x128xbf16, #tpu.memory_space<vmem>>, %arg2: memref<1x128xf32, #tpu.memory_space<vmem>>, %arg3: memref<1x128xf32, #tpu.memory_space<vmem>>, %arg4: memref<128x128xbf16, #tpu.memory_space<vmem>>, %arg5: memref<1x128xf32, #tpu.memory_space<vmem>>, %arg6: memref<32x128xbf16, #tpu.memory_space<vmem>>, %arg7: memref<1x8x128xf32, #tpu.memory_space<vmem>>) attributes {dimension_semantics = [#tpu.dimension_semantics<parallel>], iteration_bounds = array<i64: 1>, scalar_prefetch = 0 : i64, scratch_operands = 0 : i64, tpu.core_type = #tpu.core_type<tc>, window_params = [{transform_indices = @transform_0, window_bounds = array<i64: 32, 128>}, {pipeline_mode = #tpu.pipeline_mode<synchronous>, transform_indices = @transform_1, window_bounds = array<i64: 1, 128>}, {pipeline_mode = #tpu.pipeline_mode<synchronous>, transform_indices = @transform_2, window_bounds = array<i64: 1, 128>}, {pipeline_mode = #tpu.pipeline_mode<synchronous>, transform_indices = @transform_3, window_bounds = array<i64: 128, 128>}, {pipeline_mode = #tpu.pipeline_mode<synchronous>, transform_indices = @transform_4, window_bounds = array<i64: 1, 128>}, {transform_indices = @transform_5, window_bounds = array<i64: 32, 128>}, {transform_indices = @transform_6, window_bounds = array<i64: 1, 8, 128>}]} {
    %c32_i32 = arith.constant 32 : i32
    %0 = arith.muli %arg0, %c32_i32 : i32
    %c0 = arith.constant 0 : index
    %c0_0 = arith.constant 0 : index
    %1 = vector.load %arg1[%c0, %c0_0] : memref<32x128xbf16, #tpu.memory_space<vmem>>, vector<32x128xbf16>
    %2 = arith.extf %1 : vector<32x128xbf16> to vector<32x128xf32>
    %c0_1 = arith.constant 0 : index
    %c0_2 = arith.constant 0 : index
    %3 = vector.load %arg2[%c0_1, %c0_2] : memref<1x128xf32, #tpu.memory_space<vmem>>, vector<1x128xf32>
    %4 = vector.broadcast %3 : vector<1x128xf32> to vector<32x128xf32>
    %5 = arith.mulf %2, %4 : vector<32x128xf32>
    %c0_3 = arith.constant 0 : index
    %c0_4 = arith.constant 0 : index
    %6 = vector.load %arg3[%c0_3, %c0_4] : memref<1x128xf32, #tpu.memory_space<vmem>>, vector<1x128xf32>
    %7 = vector.broadcast %6 : vector<1x128xf32> to vector<32x128xf32>
    %8 = arith.addf %5, %7 : vector<32x128xf32>
    %cst = arith.constant 0.000000e+00 : f32
    %9 = vector.broadcast %cst : f32 to vector<32x128xf32>
    %10 = arith.cmpf oge, %8, %9 : vector<32x128xf32>
    %cst_5 = arith.constant 2.000000e-01 : f32
    %11 = vector.broadcast %cst_5 : f32 to vector<32x128xf32>
    %12 = arith.mulf %11, %8 : vector<32x128xf32>
    %13 = arith.select %10, %8, %12 : vector<32x128xi1>, vector<32x128xf32>
    %14 = tpu.iota {dimensions = array<i32: 0>} : vector<32x128xi32>
    %15 = vector.broadcast %0 : i32 to vector<32x128xi32>
    %16 = arith.addi %15, %14 : vector<32x128xi32>
    %17 = arith.sitofp %16 : vector<32x128xi32> to vector<32x128xf32>
    %cst_6 = arith.constant 1.600000e+01 : f32
    %18 = vector.broadcast %cst_6 : f32 to vector<32x128xf32>
    %19 = arith.divf %17, %18 : vector<32x128xf32>
    %20 = math.floor %19 : vector<32x128xf32>
    %cst_7 = arith.constant 1.600000e+01 : f32
    %21 = vector.broadcast %cst_7 : f32 to vector<32x128xf32>
    %22 = arith.mulf %20, %21 : vector<32x128xf32>
    %23 = arith.subf %17, %22 : vector<32x128xf32>
    %24 = tpu.iota {dimensions = array<i32: 1>} : vector<32x128xi32>
    %cst_8 = arith.constant 5.000000e-01 : f32
    %25 = vector.broadcast %cst_8 : f32 to vector<32x128xf32>
    %26 = arith.cmpf olt, %23, %25 : vector<32x128xf32>
    %c32_i32_9 = arith.constant 32 : i32
    %27 = vector.broadcast %c32_i32_9 : i32 to vector<32x128xi32>
    %28 = arith.cmpi slt, %24, %27 : vector<32x128xi32>
    %29 = arith.andi %26, %28 : vector<32x128xi1>
    %cst_10 = arith.constant 1.450000e+01 : f32
    %30 = vector.broadcast %cst_10 : f32 to vector<32x128xf32>
    %31 = arith.cmpf ogt, %23, %30 : vector<32x128xf32>
    %c64_i32 = arith.constant 64 : i32
    %32 = vector.broadcast %c64_i32 : i32 to vector<32x128xi32>
    %33 = arith.cmpi sge, %24, %32 : vector<32x128xi32>
    %34 = arith.andi %31, %33 : vector<32x128xi1>
    %c96_i32 = arith.constant 96 : i32
    %35 = vector.broadcast %c96_i32 : i32 to vector<32x128xi32>
    %36 = arith.cmpi slt, %24, %35 : vector<32x128xi32>
    %37 = arith.andi %34, %36 : vector<32x128xi1>
    %38 = arith.ori %29, %37 : vector<32x128xi1>
    %cst_11 = arith.constant 0.000000e+00 : f32
    %39 = vector.broadcast %cst_11 : f32 to vector<32x128xf32>
    %40 = arith.select %38, %39, %13 : vector<32x128xi1>, vector<32x128xf32>
    %41 = arith.truncf %40 : vector<32x128xf32> to vector<32x128xbf16>
    %c0_12 = arith.constant 0 : index
    %c0_13 = arith.constant 0 : index
    %42 = vector.load %arg4[%c0_12, %c0_13] : memref<128x128xbf16, #tpu.memory_space<vmem>>, vector<128x128xbf16>
    %cst_14 = arith.constant dense<0.000000e+00> : vector<32x128xf32>
    %43 = tpu.matmul %41, %42, %cst_14 {dimension_numbers = #tpu.dot_dimension_numbers<[1], [0], [0], [1], [0, 0, 1, 1], [], []>} : vector<32x128xbf16>, vector<128x128xbf16>, vector<32x128xf32> -> vector<32x128xf32>
    %c0_15 = arith.constant 0 : index
    %c0_16 = arith.constant 0 : index
    %44 = vector.load %arg5[%c0_15, %c0_16] : memref<1x128xf32, #tpu.memory_space<vmem>>, vector<1x128xf32>
    %45 = vector.broadcast %44 : vector<1x128xf32> to vector<32x128xf32>
    %46 = arith.addf %43, %45 : vector<32x128xf32>
    %47 = tpu.iota {dimensions = array<i32: 0>} : vector<32x128xi32>
    %48 = vector.broadcast %0 : i32 to vector<32x128xi32>
    %49 = arith.addi %48, %47 : vector<32x128xi32>
    %c32_i32_17 = arith.constant 32 : i32
    %50 = vector.broadcast %c32_i32_17 : i32 to vector<32x128xi32>
    %51 = arith.cmpi slt, %49, %50 : vector<32x128xi32>
    %cst_18 = arith.constant 0.000000e+00 : f32
    %52 = vector.broadcast %cst_18 : f32 to vector<32x128xf32>
    %53 = arith.select %51, %46, %52 : vector<32x128xi1>, vector<32x128xf32>
    %cst_19 = arith.constant dense<0.000000e+00> : vector<128xf32>
    %54 = vector.multi_reduction <add>, %53, %cst_19 [0] : vector<32x128xf32> to vector<128xf32>
    %55 = vector.shape_cast %54 : vector<128xf32> to vector<1x128xf32>
    %56 = arith.mulf %53, %53 : vector<32x128xf32>
    %cst_20 = arith.constant dense<0.000000e+00> : vector<128xf32>
    %57 = vector.multi_reduction <add>, %56, %cst_20 [0] : vector<32x128xf32> to vector<128xf32>
    %58 = vector.shape_cast %57 : vector<128xf32> to vector<1x128xf32>
    %59 = tpu.iota {dimensions = array<i32: 1>} : vector<1x8x128xi32>
    %c0_i32 = arith.constant 0 : i32
    %60 = vector.broadcast %c0_i32 : i32 to vector<1x8x128xi32>
    %61 = arith.cmpi eq, %59, %60 : vector<1x8x128xi32>
    %62 = vector.shape_cast %55 : vector<1x128xf32> to vector<1x1x128xf32>
    %c1_i32 = arith.constant 1 : i32
    %63 = vector.broadcast %c1_i32 : i32 to vector<1x8x128xi32>
    %64 = arith.cmpi eq, %59, %63 : vector<1x8x128xi32>
    %65 = vector.shape_cast %58 : vector<1x128xf32> to vector<1x1x128xf32>
    %cst_21 = arith.constant 0.000000e+00 : f32
    %66 = vector.shape_cast %65 : vector<1x1x128xf32> to vector<1x1x128xf32>
    %67 = vector.broadcast %66 : vector<1x1x128xf32> to vector<1x8x128xf32>
    %68 = vector.broadcast %cst_21 : f32 to vector<1x8x128xf32>
    %69 = arith.select %64, %67, %68 : vector<1x8x128xi1>, vector<1x8x128xf32>
    %70 = vector.shape_cast %62 : vector<1x1x128xf32> to vector<1x1x128xf32>
    %71 = vector.broadcast %70 : vector<1x1x128xf32> to vector<1x8x128xf32>
    %72 = arith.select %61, %71, %69 : vector<1x8x128xi1>, vector<1x8x128xf32>
    %c0_22 = arith.constant 0 : index
    %c0_23 = arith.constant 0 : index
    %c0_24 = arith.constant 0 : index
    %73 = vector.load %arg7[%c0_22, %c0_23, %c0_24] : memref<1x8x128xf32, #tpu.memory_space<vmem>>, vector<1x8x128xf32>
    tpu.vector_store %arg7[%c0_22, %c0_23, %c0_24], %72 {strides = array<i32>} : memref<1x8x128xf32, #tpu.memory_space<vmem>>, vector<1x8x128xf32>,
    %74 = arith.truncf %46 : vector<32x128xf32> to vector<32x128xbf16>
    %c0_25 = arith.constant 0 : index
    %c0_26 = arith.constant 0 : index
    %75 = vector.load %arg6[%c0_25, %c0_26] : memref<32x128xbf16, #tpu.memory_space<vmem>>, vector<32x128xbf16>
    tpu.vector_store %arg6[%c0_25, %c0_26], %74 {strides = array<i32>} : memref<32x128xbf16, #tpu.memory_space<vmem>>, vector<32x128xbf16>,
    return
  }
  func.func @transform_0(%arg0: i32) -> (i32, i32) {
    %c0_i32 = arith.constant 0 : i32
    %c0_i32_0 = arith.constant 0 : i32
    return %arg0, %c0_i32 : i32, i32
  }
  func.func @transform_1(%arg0: i32) -> (i32, i32) {
    %c0_i32 = arith.constant 0 : i32
    %c0_i32_0 = arith.constant 0 : i32
    %c0_i32_1 = arith.constant 0 : i32
    return %c0_i32, %c0_i32_0 : i32, i32
  }
  func.func @transform_2(%arg0: i32) -> (i32, i32) {
    %c0_i32 = arith.constant 0 : i32
    %c0_i32_0 = arith.constant 0 : i32
    %c0_i32_1 = arith.constant 0 : i32
    return %c0_i32, %c0_i32_0 : i32, i32
  }
  func.func @transform_3(%arg0: i32) -> (i32, i32) {
    %c0_i32 = arith.constant 0 : i32
    %c0_i32_0 = arith.constant 0 : i32
    %c0_i32_1 = arith.constant 0 : i32
    return %c0_i32, %c0_i32_0 : i32, i32
  }
  func.func @transform_4(%arg0: i32) -> (i32, i32) {
    %c0_i32 = arith.constant 0 : i32
    %c0_i32_0 = arith.constant 0 : i32
    %c0_i32_1 = arith.constant 0 : i32
    return %c0_i32, %c0_i32_0 : i32, i32
  }
  func.func @transform_5(%arg0: i32) -> (i32, i32) {
    %c0_i32 = arith.constant 0 : i32
    %c0_i32_0 = arith.constant 0 : i32
    return %arg0, %c0_i32 : i32, i32
  }
  func.func @transform_6(%arg0: i32) -> (i32, i32, i32) {
    %c0_i32 = arith.constant 0 : i32
    %c0_i32_0 = arith.constant 0 : i32
    %c0_i32_1 = arith.constant 0 : i32
    return %arg0, %c0_i32, %c0_i32_0 : i32, i32, i32
  }
}

module attributes {stable_mosaic.version = 11 : i64} {
  func.func @_fused_layer_kernel(%arg0: i32, %arg1: memref<32x128xbf16, #tpu.memory_space<vmem>>, %arg2: memref<1x128xf32, #tpu.memory_space<vmem>>, %arg3: memref<1x128xf32, #tpu.memory_space<vmem>>, %arg4: memref<128x128xbf16, #tpu.memory_space<vmem>>, %arg5: memref<1x128xf32, #tpu.memory_space<vmem>>, %arg6: memref<32x128xbf16, #tpu.memory_space<vmem>>, %arg7: memref<1x8x128xf32, #tpu.memory_space<vmem>>) attributes {dimension_semantics = [#tpu.dimension_semantics<parallel>], iteration_bounds = array<i64: 1>, scalar_prefetch = 0 : i64, scratch_operands = 0 : i64, tpu.core_type = #tpu.core_type<tc>, window_params = [{transform_indices = @transform_0, window_bounds = array<i64: 32, 128>}, {pipeline_mode = #tpu.pipeline_mode<synchronous>, transform_indices = @transform_1, window_bounds = array<i64: 1, 128>}, {pipeline_mode = #tpu.pipeline_mode<synchronous>, transform_indices = @transform_2, window_bounds = array<i64: 1, 128>}, {pipeline_mode = #tpu.pipeline_mode<synchronous>, transform_indices = @transform_3, window_bounds = array<i64: 128, 128>}, {pipeline_mode = #tpu.pipeline_mode<synchronous>, transform_indices = @transform_4, window_bounds = array<i64: 1, 128>}, {transform_indices = @transform_5, window_bounds = array<i64: 32, 128>}, {transform_indices = @transform_6, window_bounds = array<i64: 1, 8, 128>}]} {
    %c32_i32 = arith.constant 32 : i32
    %0 = arith.muli %arg0, %c32_i32 : i32
    %c0 = arith.constant 0 : index
    %c0_0 = arith.constant 0 : index
    %1 = vector.load %arg1[%c0, %c0_0] : memref<32x128xbf16, #tpu.memory_space<vmem>>, vector<32x128xbf16>
    %2 = arith.extf %1 : vector<32x128xbf16> to vector<32x128xf32>
    %c0_1 = arith.constant 0 : index
    %c0_2 = arith.constant 0 : index
    %3 = vector.load %arg2[%c0_1, %c0_2] : memref<1x128xf32, #tpu.memory_space<vmem>>, vector<1x128xf32>
    %4 = vector.broadcast %3 : vector<1x128xf32> to vector<32x128xf32>
    %5 = arith.mulf %2, %4 : vector<32x128xf32>
    %c0_3 = arith.constant 0 : index
    %c0_4 = arith.constant 0 : index
    %6 = vector.load %arg3[%c0_3, %c0_4] : memref<1x128xf32, #tpu.memory_space<vmem>>, vector<1x128xf32>
    %7 = vector.broadcast %6 : vector<1x128xf32> to vector<32x128xf32>
    %8 = arith.addf %5, %7 : vector<32x128xf32>
    %cst = arith.constant 0.000000e+00 : f32
    %9 = vector.broadcast %cst : f32 to vector<32x128xf32>
    %10 = arith.cmpf oge, %8, %9 : vector<32x128xf32>
    %cst_5 = arith.constant 2.000000e-01 : f32
    %11 = vector.broadcast %cst_5 : f32 to vector<32x128xf32>
    %12 = arith.mulf %11, %8 : vector<32x128xf32>
    %13 = arith.select %10, %8, %12 : vector<32x128xi1>, vector<32x128xf32>
    %14 = tpu.iota {dimensions = array<i32: 0>} : vector<32x128xi32>
    %15 = vector.broadcast %0 : i32 to vector<32x128xi32>
    %16 = arith.addi %15, %14 : vector<32x128xi32>
    %17 = arith.sitofp %16 : vector<32x128xi32> to vector<32x128xf32>
    %cst_6 = arith.constant 1.600000e+01 : f32
    %18 = vector.broadcast %cst_6 : f32 to vector<32x128xf32>
    %19 = arith.divf %17, %18 : vector<32x128xf32>
    %20 = math.floor %19 : vector<32x128xf32>
    %cst_7 = arith.constant 1.600000e+01 : f32
    %21 = vector.broadcast %cst_7 : f32 to vector<32x128xf32>
    %22 = arith.mulf %20, %21 : vector<32x128xf32>
    %23 = arith.subf %17, %22 : vector<32x128xf32>
    %24 = tpu.iota {dimensions = array<i32: 1>} : vector<32x128xi32>
    %cst_8 = arith.constant 5.000000e-01 : f32
    %25 = vector.broadcast %cst_8 : f32 to vector<32x128xf32>
    %26 = arith.cmpf olt, %23, %25 : vector<32x128xf32>
    %c16_i32 = arith.constant 16 : i32
    %27 = vector.broadcast %c16_i32 : i32 to vector<32x128xi32>
    %28 = arith.cmpi slt, %24, %27 : vector<32x128xi32>
    %29 = arith.andi %26, %28 : vector<32x128xi1>
    %cst_9 = arith.constant 1.450000e+01 : f32
    %30 = vector.broadcast %cst_9 : f32 to vector<32x128xf32>
    %31 = arith.cmpf ogt, %23, %30 : vector<32x128xf32>
    %c32_i32_10 = arith.constant 32 : i32
    %32 = vector.broadcast %c32_i32_10 : i32 to vector<32x128xi32>
    %33 = arith.cmpi sge, %24, %32 : vector<32x128xi32>
    %34 = arith.andi %31, %33 : vector<32x128xi1>
    %c48_i32 = arith.constant 48 : i32
    %35 = vector.broadcast %c48_i32 : i32 to vector<32x128xi32>
    %36 = arith.cmpi slt, %24, %35 : vector<32x128xi32>
    %37 = arith.andi %34, %36 : vector<32x128xi1>
    %38 = arith.ori %29, %37 : vector<32x128xi1>
    %cst_11 = arith.constant 0.000000e+00 : f32
    %39 = vector.broadcast %cst_11 : f32 to vector<32x128xf32>
    %40 = arith.select %38, %39, %13 : vector<32x128xi1>, vector<32x128xf32>
    %41 = arith.truncf %40 : vector<32x128xf32> to vector<32x128xbf16>
    %c0_12 = arith.constant 0 : index
    %c0_13 = arith.constant 0 : index
    %42 = vector.load %arg4[%c0_12, %c0_13] : memref<128x128xbf16, #tpu.memory_space<vmem>>, vector<128x128xbf16>
    %cst_14 = arith.constant dense<0.000000e+00> : vector<32x128xf32>
    %43 = tpu.matmul %41, %42, %cst_14 {dimension_numbers = #tpu.dot_dimension_numbers<[1], [0], [0], [1], [0, 0, 1, 1], [], []>} : vector<32x128xbf16>, vector<128x128xbf16>, vector<32x128xf32> -> vector<32x128xf32>
    %c0_15 = arith.constant 0 : index
    %c0_16 = arith.constant 0 : index
    %44 = vector.load %arg5[%c0_15, %c0_16] : memref<1x128xf32, #tpu.memory_space<vmem>>, vector<1x128xf32>
    %45 = vector.broadcast %44 : vector<1x128xf32> to vector<32x128xf32>
    %46 = arith.addf %43, %45 : vector<32x128xf32>
    %47 = tpu.iota {dimensions = array<i32: 0>} : vector<32x128xi32>
    %48 = vector.broadcast %0 : i32 to vector<32x128xi32>
    %49 = arith.addi %48, %47 : vector<32x128xi32>
    %c32_i32_17 = arith.constant 32 : i32
    %50 = vector.broadcast %c32_i32_17 : i32 to vector<32x128xi32>
    %51 = arith.cmpi slt, %49, %50 : vector<32x128xi32>
    %cst_18 = arith.constant 0.000000e+00 : f32
    %52 = vector.broadcast %cst_18 : f32 to vector<32x128xf32>
    %53 = arith.select %51, %46, %52 : vector<32x128xi1>, vector<32x128xf32>
    %cst_19 = arith.constant dense<0.000000e+00> : vector<128xf32>
    %54 = vector.multi_reduction <add>, %53, %cst_19 [0] : vector<32x128xf32> to vector<128xf32>
    %55 = vector.shape_cast %54 : vector<128xf32> to vector<1x128xf32>
    %56 = arith.mulf %53, %53 : vector<32x128xf32>
    %cst_20 = arith.constant dense<0.000000e+00> : vector<128xf32>
    %57 = vector.multi_reduction <add>, %56, %cst_20 [0] : vector<32x128xf32> to vector<128xf32>
    %58 = vector.shape_cast %57 : vector<128xf32> to vector<1x128xf32>
    %59 = tpu.iota {dimensions = array<i32: 1>} : vector<1x8x128xi32>
    %c0_i32 = arith.constant 0 : i32
    %60 = vector.broadcast %c0_i32 : i32 to vector<1x8x128xi32>
    %61 = arith.cmpi eq, %59, %60 : vector<1x8x128xi32>
    %62 = vector.shape_cast %55 : vector<1x128xf32> to vector<1x1x128xf32>
    %c1_i32 = arith.constant 1 : i32
    %63 = vector.broadcast %c1_i32 : i32 to vector<1x8x128xi32>
    %64 = arith.cmpi eq, %59, %63 : vector<1x8x128xi32>
    %65 = vector.shape_cast %58 : vector<1x128xf32> to vector<1x1x128xf32>
    %cst_21 = arith.constant 0.000000e+00 : f32
    %66 = vector.shape_cast %65 : vector<1x1x128xf32> to vector<1x1x128xf32>
    %67 = vector.broadcast %66 : vector<1x1x128xf32> to vector<1x8x128xf32>
    %68 = vector.broadcast %cst_21 : f32 to vector<1x8x128xf32>
    %69 = arith.select %64, %67, %68 : vector<1x8x128xi1>, vector<1x8x128xf32>
    %70 = vector.shape_cast %62 : vector<1x1x128xf32> to vector<1x1x128xf32>
    %71 = vector.broadcast %70 : vector<1x1x128xf32> to vector<1x8x128xf32>
    %72 = arith.select %61, %71, %69 : vector<1x8x128xi1>, vector<1x8x128xf32>
    %c0_22 = arith.constant 0 : index
    %c0_23 = arith.constant 0 : index
    %c0_24 = arith.constant 0 : index
    %73 = vector.load %arg7[%c0_22, %c0_23, %c0_24] : memref<1x8x128xf32, #tpu.memory_space<vmem>>, vector<1x8x128xf32>
    tpu.vector_store %arg7[%c0_22, %c0_23, %c0_24], %72 {strides = array<i32>} : memref<1x8x128xf32, #tpu.memory_space<vmem>>, vector<1x8x128xf32>,
    %74 = arith.truncf %46 : vector<32x128xf32> to vector<32x128xbf16>
    %c0_25 = arith.constant 0 : index
    %c0_26 = arith.constant 0 : index
    %75 = vector.load %arg6[%c0_25, %c0_26] : memref<32x128xbf16, #tpu.memory_space<vmem>>, vector<32x128xbf16>
    tpu.vector_store %arg6[%c0_25, %c0_26], %74 {strides = array<i32>} : memref<32x128xbf16, #tpu.memory_space<vmem>>, vector<32x128xbf16>,
    return
  }
  func.func @transform_0(%arg0: i32) -> (i32, i32) {
    %c0_i32 = arith.constant 0 : i32
    %c0_i32_0 = arith.constant 0 : i32
    return %arg0, %c0_i32 : i32, i32
  }
  func.func @transform_1(%arg0: i32) -> (i32, i32) {
    %c0_i32 = arith.constant 0 : i32
    %c0_i32_0 = arith.constant 0 : i32
    %c0_i32_1 = arith.constant 0 : i32
    return %c0_i32, %c0_i32_0 : i32, i32
  }
  func.func @transform_2(%arg0: i32) -> (i32, i32) {
    %c0_i32 = arith.constant 0 : i32
    %c0_i32_0 = arith.constant 0 : i32
    %c0_i32_1 = arith.constant 0 : i32
    return %c0_i32, %c0_i32_0 : i32, i32
  }
  func.func @transform_3(%arg0: i32) -> (i32, i32) {
    %c0_i32 = arith.constant 0 : i32
    %c0_i32_0 = arith.constant 0 : i32
    %c0_i32_1 = arith.constant 0 : i32
    return %c0_i32, %c0_i32_0 : i32, i32
  }
  func.func @transform_4(%arg0: i32) -> (i32, i32) {
    %c0_i32 = arith.constant 0 : i32
    %c0_i32_0 = arith.constant 0 : i32
    %c0_i32_1 = arith.constant 0 : i32
    return %c0_i32, %c0_i32_0 : i32, i32
  }
  func.func @transform_5(%arg0: i32) -> (i32, i32) {
    %c0_i32 = arith.constant 0 : i32
    %c0_i32_0 = arith.constant 0 : i32
    return %arg0, %c0_i32 : i32, i32
  }
  func.func @transform_6(%arg0: i32) -> (i32, i32, i32) {
    %c0_i32 = arith.constant 0 : i32
    %c0_i32_0 = arith.constant 0 : i32
    %c0_i32_1 = arith.constant 0 : i32
    return %arg0, %c0_i32, %c0_i32_0 : i32, i32, i32
  }
}

module attributes {stable_mosaic.version = 11 : i64} {
  func.func @_fused_layer_kernel(%arg0: i32, %arg1: memref<32x128xbf16, #tpu.memory_space<vmem>>, %arg2: memref<1x128xf32, #tpu.memory_space<vmem>>, %arg3: memref<1x128xf32, #tpu.memory_space<vmem>>, %arg4: memref<128x128xbf16, #tpu.memory_space<vmem>>, %arg5: memref<1x128xf32, #tpu.memory_space<vmem>>, %arg6: memref<32x128xbf16, #tpu.memory_space<vmem>>, %arg7: memref<1x8x128xf32, #tpu.memory_space<vmem>>) attributes {dimension_semantics = [#tpu.dimension_semantics<parallel>], iteration_bounds = array<i64: 1>, scalar_prefetch = 0 : i64, scratch_operands = 0 : i64, tpu.core_type = #tpu.core_type<tc>, window_params = [{transform_indices = @transform_0, window_bounds = array<i64: 32, 128>}, {pipeline_mode = #tpu.pipeline_mode<synchronous>, transform_indices = @transform_1, window_bounds = array<i64: 1, 128>}, {pipeline_mode = #tpu.pipeline_mode<synchronous>, transform_indices = @transform_2, window_bounds = array<i64: 1, 128>}, {pipeline_mode = #tpu.pipeline_mode<synchronous>, transform_indices = @transform_3, window_bounds = array<i64: 128, 128>}, {pipeline_mode = #tpu.pipeline_mode<synchronous>, transform_indices = @transform_4, window_bounds = array<i64: 1, 128>}, {transform_indices = @transform_5, window_bounds = array<i64: 32, 128>}, {transform_indices = @transform_6, window_bounds = array<i64: 1, 8, 128>}]} {
    %c32_i32 = arith.constant 32 : i32
    %0 = arith.muli %arg0, %c32_i32 : i32
    %c0 = arith.constant 0 : index
    %c0_0 = arith.constant 0 : index
    %1 = vector.load %arg1[%c0, %c0_0] : memref<32x128xbf16, #tpu.memory_space<vmem>>, vector<32x128xbf16>
    %2 = arith.extf %1 : vector<32x128xbf16> to vector<32x128xf32>
    %c0_1 = arith.constant 0 : index
    %c0_2 = arith.constant 0 : index
    %3 = vector.load %arg2[%c0_1, %c0_2] : memref<1x128xf32, #tpu.memory_space<vmem>>, vector<1x128xf32>
    %4 = vector.broadcast %3 : vector<1x128xf32> to vector<32x128xf32>
    %5 = arith.mulf %2, %4 : vector<32x128xf32>
    %c0_3 = arith.constant 0 : index
    %c0_4 = arith.constant 0 : index
    %6 = vector.load %arg3[%c0_3, %c0_4] : memref<1x128xf32, #tpu.memory_space<vmem>>, vector<1x128xf32>
    %7 = vector.broadcast %6 : vector<1x128xf32> to vector<32x128xf32>
    %8 = arith.addf %5, %7 : vector<32x128xf32>
    %cst = arith.constant 0.000000e+00 : f32
    %9 = vector.broadcast %cst : f32 to vector<32x128xf32>
    %10 = arith.cmpf oge, %8, %9 : vector<32x128xf32>
    %cst_5 = arith.constant 2.000000e-01 : f32
    %11 = vector.broadcast %cst_5 : f32 to vector<32x128xf32>
    %12 = arith.mulf %11, %8 : vector<32x128xf32>
    %13 = arith.select %10, %8, %12 : vector<32x128xi1>, vector<32x128xf32>
    %14 = tpu.iota {dimensions = array<i32: 0>} : vector<32x128xi32>
    %15 = vector.broadcast %0 : i32 to vector<32x128xi32>
    %16 = arith.addi %15, %14 : vector<32x128xi32>
    %17 = arith.sitofp %16 : vector<32x128xi32> to vector<32x128xf32>
    %cst_6 = arith.constant 1.600000e+01 : f32
    %18 = vector.broadcast %cst_6 : f32 to vector<32x128xf32>
    %19 = arith.divf %17, %18 : vector<32x128xf32>
    %20 = math.floor %19 : vector<32x128xf32>
    %cst_7 = arith.constant 1.600000e+01 : f32
    %21 = vector.broadcast %cst_7 : f32 to vector<32x128xf32>
    %22 = arith.mulf %20, %21 : vector<32x128xf32>
    %23 = arith.subf %17, %22 : vector<32x128xf32>
    %24 = tpu.iota {dimensions = array<i32: 1>} : vector<32x128xi32>
    %cst_8 = arith.constant 5.000000e-01 : f32
    %25 = vector.broadcast %cst_8 : f32 to vector<32x128xf32>
    %26 = arith.cmpf olt, %23, %25 : vector<32x128xf32>
    %c8_i32 = arith.constant 8 : i32
    %27 = vector.broadcast %c8_i32 : i32 to vector<32x128xi32>
    %28 = arith.cmpi slt, %24, %27 : vector<32x128xi32>
    %29 = arith.andi %26, %28 : vector<32x128xi1>
    %cst_9 = arith.constant 1.450000e+01 : f32
    %30 = vector.broadcast %cst_9 : f32 to vector<32x128xf32>
    %31 = arith.cmpf ogt, %23, %30 : vector<32x128xf32>
    %c16_i32 = arith.constant 16 : i32
    %32 = vector.broadcast %c16_i32 : i32 to vector<32x128xi32>
    %33 = arith.cmpi sge, %24, %32 : vector<32x128xi32>
    %34 = arith.andi %31, %33 : vector<32x128xi1>
    %c24_i32 = arith.constant 24 : i32
    %35 = vector.broadcast %c24_i32 : i32 to vector<32x128xi32>
    %36 = arith.cmpi slt, %24, %35 : vector<32x128xi32>
    %37 = arith.andi %34, %36 : vector<32x128xi1>
    %38 = arith.ori %29, %37 : vector<32x128xi1>
    %cst_10 = arith.constant 0.000000e+00 : f32
    %39 = vector.broadcast %cst_10 : f32 to vector<32x128xf32>
    %40 = arith.select %38, %39, %13 : vector<32x128xi1>, vector<32x128xf32>
    %41 = arith.truncf %40 : vector<32x128xf32> to vector<32x128xbf16>
    %c0_11 = arith.constant 0 : index
    %c0_12 = arith.constant 0 : index
    %42 = vector.load %arg4[%c0_11, %c0_12] : memref<128x128xbf16, #tpu.memory_space<vmem>>, vector<128x128xbf16>
    %cst_13 = arith.constant dense<0.000000e+00> : vector<32x128xf32>
    %43 = tpu.matmul %41, %42, %cst_13 {dimension_numbers = #tpu.dot_dimension_numbers<[1], [0], [0], [1], [0, 0, 1, 1], [], []>} : vector<32x128xbf16>, vector<128x128xbf16>, vector<32x128xf32> -> vector<32x128xf32>
    %c0_14 = arith.constant 0 : index
    %c0_15 = arith.constant 0 : index
    %44 = vector.load %arg5[%c0_14, %c0_15] : memref<1x128xf32, #tpu.memory_space<vmem>>, vector<1x128xf32>
    %45 = vector.broadcast %44 : vector<1x128xf32> to vector<32x128xf32>
    %46 = arith.addf %43, %45 : vector<32x128xf32>
    %47 = tpu.iota {dimensions = array<i32: 0>} : vector<32x128xi32>
    %48 = vector.broadcast %0 : i32 to vector<32x128xi32>
    %49 = arith.addi %48, %47 : vector<32x128xi32>
    %c32_i32_16 = arith.constant 32 : i32
    %50 = vector.broadcast %c32_i32_16 : i32 to vector<32x128xi32>
    %51 = arith.cmpi slt, %49, %50 : vector<32x128xi32>
    %cst_17 = arith.constant 0.000000e+00 : f32
    %52 = vector.broadcast %cst_17 : f32 to vector<32x128xf32>
    %53 = arith.select %51, %46, %52 : vector<32x128xi1>, vector<32x128xf32>
    %cst_18 = arith.constant dense<0.000000e+00> : vector<128xf32>
    %54 = vector.multi_reduction <add>, %53, %cst_18 [0] : vector<32x128xf32> to vector<128xf32>
    %55 = vector.shape_cast %54 : vector<128xf32> to vector<1x128xf32>
    %56 = arith.mulf %53, %53 : vector<32x128xf32>
    %cst_19 = arith.constant dense<0.000000e+00> : vector<128xf32>
    %57 = vector.multi_reduction <add>, %56, %cst_19 [0] : vector<32x128xf32> to vector<128xf32>
    %58 = vector.shape_cast %57 : vector<128xf32> to vector<1x128xf32>
    %59 = tpu.iota {dimensions = array<i32: 1>} : vector<1x8x128xi32>
    %c0_i32 = arith.constant 0 : i32
    %60 = vector.broadcast %c0_i32 : i32 to vector<1x8x128xi32>
    %61 = arith.cmpi eq, %59, %60 : vector<1x8x128xi32>
    %62 = vector.shape_cast %55 : vector<1x128xf32> to vector<1x1x128xf32>
    %c1_i32 = arith.constant 1 : i32
    %63 = vector.broadcast %c1_i32 : i32 to vector<1x8x128xi32>
    %64 = arith.cmpi eq, %59, %63 : vector<1x8x128xi32>
    %65 = vector.shape_cast %58 : vector<1x128xf32> to vector<1x1x128xf32>
    %cst_20 = arith.constant 0.000000e+00 : f32
    %66 = vector.shape_cast %65 : vector<1x1x128xf32> to vector<1x1x128xf32>
    %67 = vector.broadcast %66 : vector<1x1x128xf32> to vector<1x8x128xf32>
    %68 = vector.broadcast %cst_20 : f32 to vector<1x8x128xf32>
    %69 = arith.select %64, %67, %68 : vector<1x8x128xi1>, vector<1x8x128xf32>
    %70 = vector.shape_cast %62 : vector<1x1x128xf32> to vector<1x1x128xf32>
    %71 = vector.broadcast %70 : vector<1x1x128xf32> to vector<1x8x128xf32>
    %72 = arith.select %61, %71, %69 : vector<1x8x128xi1>, vector<1x8x128xf32>
    %c0_21 = arith.constant 0 : index
    %c0_22 = arith.constant 0 : index
    %c0_23 = arith.constant 0 : index
    %73 = vector.load %arg7[%c0_21, %c0_22, %c0_23] : memref<1x8x128xf32, #tpu.memory_space<vmem>>, vector<1x8x128xf32>
    tpu.vector_store %arg7[%c0_21, %c0_22, %c0_23], %72 {strides = array<i32>} : memref<1x8x128xf32, #tpu.memory_space<vmem>>, vector<1x8x128xf32>,
    %74 = arith.truncf %46 : vector<32x128xf32> to vector<32x128xbf16>
    %c0_24 = arith.constant 0 : index
    %c0_25 = arith.constant 0 : index
    %75 = vector.load %arg6[%c0_24, %c0_25] : memref<32x128xbf16, #tpu.memory_space<vmem>>, vector<32x128xbf16>
    tpu.vector_store %arg6[%c0_24, %c0_25], %74 {strides = array<i32>} : memref<32x128xbf16, #tpu.memory_space<vmem>>, vector<32x128xbf16>,
    return
  }
  func.func @transform_0(%arg0: i32) -> (i32, i32) {
    %c0_i32 = arith.constant 0 : i32
    %c0_i32_0 = arith.constant 0 : i32
    return %arg0, %c0_i32 : i32, i32
  }
  func.func @transform_1(%arg0: i32) -> (i32, i32) {
    %c0_i32 = arith.constant 0 : i32
    %c0_i32_0 = arith.constant 0 : i32
    %c0_i32_1 = arith.constant 0 : i32
    return %c0_i32, %c0_i32_0 : i32, i32
  }
  func.func @transform_2(%arg0: i32) -> (i32, i32) {
    %c0_i32 = arith.constant 0 : i32
    %c0_i32_0 = arith.constant 0 : i32
    %c0_i32_1 = arith.constant 0 : i32
    return %c0_i32, %c0_i32_0 : i32, i32
  }
  func.func @transform_3(%arg0: i32) -> (i32, i32) {
    %c0_i32 = arith.constant 0 : i32
    %c0_i32_0 = arith.constant 0 : i32
    %c0_i32_1 = arith.constant 0 : i32
    return %c0_i32, %c0_i32_0 : i32, i32
  }
  func.func @transform_4(%arg0: i32) -> (i32, i32) {
    %c0_i32 = arith.constant 0 : i32
    %c0_i32_0 = arith.constant 0 : i32
    %c0_i32_1 = arith.constant 0 : i32
    return %c0_i32, %c0_i32_0 : i32, i32
  }
  func.func @transform_5(%arg0: i32) -> (i32, i32) {
    %c0_i32 = arith.constant 0 : i32
    %c0_i32_0 = arith.constant 0 : i32
    return %arg0, %c0_i32 : i32, i32
  }
  func.func @transform_6(%arg0: i32) -> (i32, i32, i32) {
    %c0_i32 = arith.constant 0 : i32
    %c0_i32_0 = arith.constant 0 : i32
    %c0_i32_1 = arith.constant 0 : i32
    return %arg0, %c0_i32, %c0_i32_0 : i32, i32, i32
  }
}

module attributes {stable_mosaic.version = 11 : i64} {
  func.func @_fused_layer_kernel(%arg0: i32, %arg1: memref<32x128xbf16, #tpu.memory_space<vmem>>, %arg2: memref<1x128xf32, #tpu.memory_space<vmem>>, %arg3: memref<1x128xf32, #tpu.memory_space<vmem>>, %arg4: memref<128x128xbf16, #tpu.memory_space<vmem>>, %arg5: memref<1x128xf32, #tpu.memory_space<vmem>>, %arg6: memref<128x128xbf16, #tpu.memory_space<vmem>>, %arg7: memref<1x128xf32, #tpu.memory_space<vmem>>, %arg8: memref<32x128xf32, #tpu.memory_space<vmem>>) attributes {dimension_semantics = [#tpu.dimension_semantics<parallel>], iteration_bounds = array<i64: 1>, scalar_prefetch = 0 : i64, scratch_operands = 0 : i64, tpu.core_type = #tpu.core_type<tc>, window_params = [{transform_indices = @transform_0, window_bounds = array<i64: 32, 128>}, {pipeline_mode = #tpu.pipeline_mode<synchronous>, transform_indices = @transform_1, window_bounds = array<i64: 1, 128>}, {pipeline_mode = #tpu.pipeline_mode<synchronous>, transform_indices = @transform_2, window_bounds = array<i64: 1, 128>}, {pipeline_mode = #tpu.pipeline_mode<synchronous>, transform_indices = @transform_3, window_bounds = array<i64: 128, 128>}, {pipeline_mode = #tpu.pipeline_mode<synchronous>, transform_indices = @transform_4, window_bounds = array<i64: 1, 128>}, {pipeline_mode = #tpu.pipeline_mode<synchronous>, transform_indices = @transform_5, window_bounds = array<i64: 128, 128>}, {pipeline_mode = #tpu.pipeline_mode<synchronous>, transform_indices = @transform_6, window_bounds = array<i64: 1, 128>}, {transform_indices = @transform_7, window_bounds = array<i64: 32, 128>}]} {
    %c32_i32 = arith.constant 32 : i32
    %0 = arith.muli %arg0, %c32_i32 : i32
    %c0 = arith.constant 0 : index
    %c0_0 = arith.constant 0 : index
    %1 = vector.load %arg1[%c0, %c0_0] : memref<32x128xbf16, #tpu.memory_space<vmem>>, vector<32x128xbf16>
    %2 = arith.extf %1 : vector<32x128xbf16> to vector<32x128xf32>
    %c0_1 = arith.constant 0 : index
    %c0_2 = arith.constant 0 : index
    %3 = vector.load %arg2[%c0_1, %c0_2] : memref<1x128xf32, #tpu.memory_space<vmem>>, vector<1x128xf32>
    %4 = vector.broadcast %3 : vector<1x128xf32> to vector<32x128xf32>
    %5 = arith.mulf %2, %4 : vector<32x128xf32>
    %c0_3 = arith.constant 0 : index
    %c0_4 = arith.constant 0 : index
    %6 = vector.load %arg3[%c0_3, %c0_4] : memref<1x128xf32, #tpu.memory_space<vmem>>, vector<1x128xf32>
    %7 = vector.broadcast %6 : vector<1x128xf32> to vector<32x128xf32>
    %8 = arith.addf %5, %7 : vector<32x128xf32>
    %cst = arith.constant 0.000000e+00 : f32
    %9 = vector.broadcast %cst : f32 to vector<32x128xf32>
    %10 = arith.cmpf oge, %8, %9 : vector<32x128xf32>
    %cst_5 = arith.constant 2.000000e-01 : f32
    %11 = vector.broadcast %cst_5 : f32 to vector<32x128xf32>
    %12 = arith.mulf %11, %8 : vector<32x128xf32>
    %13 = arith.select %10, %8, %12 : vector<32x128xi1>, vector<32x128xf32>
    %14 = tpu.iota {dimensions = array<i32: 0>} : vector<32x128xi32>
    %15 = vector.broadcast %0 : i32 to vector<32x128xi32>
    %16 = arith.addi %15, %14 : vector<32x128xi32>
    %17 = arith.sitofp %16 : vector<32x128xi32> to vector<32x128xf32>
    %cst_6 = arith.constant 1.600000e+01 : f32
    %18 = vector.broadcast %cst_6 : f32 to vector<32x128xf32>
    %19 = arith.divf %17, %18 : vector<32x128xf32>
    %20 = math.floor %19 : vector<32x128xf32>
    %cst_7 = arith.constant 1.600000e+01 : f32
    %21 = vector.broadcast %cst_7 : f32 to vector<32x128xf32>
    %22 = arith.mulf %20, %21 : vector<32x128xf32>
    %23 = arith.subf %17, %22 : vector<32x128xf32>
    %24 = tpu.iota {dimensions = array<i32: 1>} : vector<32x128xi32>
    %cst_8 = arith.constant 5.000000e-01 : f32
    %25 = vector.broadcast %cst_8 : f32 to vector<32x128xf32>
    %26 = arith.cmpf olt, %23, %25 : vector<32x128xf32>
    %c16_i32 = arith.constant 16 : i32
    %27 = vector.broadcast %c16_i32 : i32 to vector<32x128xi32>
    %28 = arith.cmpi slt, %24, %27 : vector<32x128xi32>
    %29 = arith.andi %26, %28 : vector<32x128xi1>
    %cst_9 = arith.constant 1.450000e+01 : f32
    %30 = vector.broadcast %cst_9 : f32 to vector<32x128xf32>
    %31 = arith.cmpf ogt, %23, %30 : vector<32x128xf32>
    %c32_i32_10 = arith.constant 32 : i32
    %32 = vector.broadcast %c32_i32_10 : i32 to vector<32x128xi32>
    %33 = arith.cmpi sge, %24, %32 : vector<32x128xi32>
    %34 = arith.andi %31, %33 : vector<32x128xi1>
    %c48_i32 = arith.constant 48 : i32
    %35 = vector.broadcast %c48_i32 : i32 to vector<32x128xi32>
    %36 = arith.cmpi slt, %24, %35 : vector<32x128xi32>
    %37 = arith.andi %34, %36 : vector<32x128xi1>
    %38 = arith.ori %29, %37 : vector<32x128xi1>
    %cst_11 = arith.constant 0.000000e+00 : f32
    %39 = vector.broadcast %cst_11 : f32 to vector<32x128xf32>
    %40 = arith.select %38, %39, %13 : vector<32x128xi1>, vector<32x128xf32>
    %41 = arith.truncf %40 : vector<32x128xf32> to vector<32x128xbf16>
    %c0_12 = arith.constant 0 : index
    %c0_13 = arith.constant 0 : index
    %42 = vector.load %arg4[%c0_12, %c0_13] : memref<128x128xbf16, #tpu.memory_space<vmem>>, vector<128x128xbf16>
    %cst_14 = arith.constant dense<0.000000e+00> : vector<32x128xf32>
    %43 = tpu.matmul %41, %42, %cst_14 {dimension_numbers = #tpu.dot_dimension_numbers<[1], [0], [0], [1], [0, 0, 1, 1], [], []>} : vector<32x128xbf16>, vector<128x128xbf16>, vector<32x128xf32> -> vector<32x128xf32>
    %c0_15 = arith.constant 0 : index
    %c0_16 = arith.constant 0 : index
    %44 = vector.load %arg5[%c0_15, %c0_16] : memref<1x128xf32, #tpu.memory_space<vmem>>, vector<1x128xf32>
    %45 = vector.broadcast %44 : vector<1x128xf32> to vector<32x128xf32>
    %46 = arith.addf %43, %45 : vector<32x128xf32>
    %47 = arith.truncf %46 : vector<32x128xf32> to vector<32x128xbf16>
    %c0_17 = arith.constant 0 : index
    %c0_18 = arith.constant 0 : index
    %48 = vector.load %arg6[%c0_17, %c0_18] : memref<128x128xbf16, #tpu.memory_space<vmem>>, vector<128x128xbf16>
    %cst_19 = arith.constant dense<0.000000e+00> : vector<32x128xf32>
    %49 = tpu.matmul %47, %48, %cst_19 {dimension_numbers = #tpu.dot_dimension_numbers<[1], [0], [0], [1], [0, 0, 1, 1], [], []>} : vector<32x128xbf16>, vector<128x128xbf16>, vector<32x128xf32> -> vector<32x128xf32>
    %c0_20 = arith.constant 0 : index
    %c0_21 = arith.constant 0 : index
    %50 = vector.load %arg7[%c0_20, %c0_21] : memref<1x128xf32, #tpu.memory_space<vmem>>, vector<1x128xf32>
    %51 = vector.broadcast %50 : vector<1x128xf32> to vector<32x128xf32>
    %52 = arith.addf %49, %51 : vector<32x128xf32>
    %c0_22 = arith.constant 0 : index
    %c0_23 = arith.constant 0 : index
    %53 = vector.load %arg8[%c0_22, %c0_23] : memref<32x128xf32, #tpu.memory_space<vmem>>, vector<32x128xf32>
    tpu.vector_store %arg8[%c0_22, %c0_23], %52 {strides = array<i32>} : memref<32x128xf32, #tpu.memory_space<vmem>>, vector<32x128xf32>,
    return
  }
  func.func @transform_0(%arg0: i32) -> (i32, i32) {
    %c0_i32 = arith.constant 0 : i32
    %c0_i32_0 = arith.constant 0 : i32
    return %arg0, %c0_i32 : i32, i32
  }
  func.func @transform_1(%arg0: i32) -> (i32, i32) {
    %c0_i32 = arith.constant 0 : i32
    %c0_i32_0 = arith.constant 0 : i32
    %c0_i32_1 = arith.constant 0 : i32
    return %c0_i32, %c0_i32_0 : i32, i32
  }
  func.func @transform_2(%arg0: i32) -> (i32, i32) {
    %c0_i32 = arith.constant 0 : i32
    %c0_i32_0 = arith.constant 0 : i32
    %c0_i32_1 = arith.constant 0 : i32
    return %c0_i32, %c0_i32_0 : i32, i32
  }
  func.func @transform_3(%arg0: i32) -> (i32, i32) {
    %c0_i32 = arith.constant 0 : i32
    %c0_i32_0 = arith.constant 0 : i32
    %c0_i32_1 = arith.constant 0 : i32
    return %c0_i32, %c0_i32_0 : i32, i32
  }
  func.func @transform_4(%arg0: i32) -> (i32, i32) {
    %c0_i32 = arith.constant 0 : i32
    %c0_i32_0 = arith.constant 0 : i32
    %c0_i32_1 = arith.constant 0 : i32
    return %c0_i32, %c0_i32_0 : i32, i32
  }
  func.func @transform_5(%arg0: i32) -> (i32, i32) {
    %c0_i32 = arith.constant 0 : i32
    %c0_i32_0 = arith.constant 0 : i32
    %c0_i32_1 = arith.constant 0 : i32
    return %c0_i32, %c0_i32_0 : i32, i32
  }
  func.func @transform_6(%arg0: i32) -> (i32, i32) {
    %c0_i32 = arith.constant 0 : i32
    %c0_i32_0 = arith.constant 0 : i32
    %c0_i32_1 = arith.constant 0 : i32
    return %c0_i32, %c0_i32_0 : i32, i32
  }
  func.func @transform_7(%arg0: i32) -> (i32, i32) {
    %c0_i32 = arith.constant 0 : i32
    %c0_i32_0 = arith.constant 0 : i32
    return %arg0, %c0_i32 : i32, i32
  }
}

</mosaic_0001>

<bundles_post_ra>
// kernel: tile.48
= control target key start
LH: loop header
LB: loop body
LE: loop exit
PB: predicated region body
PF: predicated region fallthrough
CT: control target
= control target key end

     0   :  { %s22_s0 = inlined_call_operand.vmem [shape: f32[32], index: 0, kind: input, shape index: {}]   ;;  %s23_s1 = inlined_call_operand.vmem [shape: f32[3,32], index: 1, kind: output, shape index: {}]  }
   0x1   :  { %v4_v0 = vld [vmem:[%s22_s0] ss:$0 sm:$0xff] }
   0x2   :  { %5 = vst [vmem:[%s23_s1] sm:$0xf] %v4_v0 }

// kernel: tile.49
= control target key start
LH: loop header
LB: loop body
LE: loop exit
PB: predicated region body
PF: predicated region fallthrough
CT: control target
= control target key end

     0   :  { %vm7_vm0 = vcmask 261120   ;;  %s30_s8 = smov 32   ;;  %vm13_vm1 = vcmask 785920   ;;  %vm19_vm2 = vcmask 523520   ;;  %s47_s0 = inlined_call_operand.vmem [shape: f32[3,32], index: 0, kind: input, shape index: {}]   ;;  %s48_s1 = inlined_call_operand.vmem [shape: f32[96], index: 1, kind: output, shape index: {}]  }
   0x1   :  { %v4_v0 = vld [vmem:[%s47_s0] sm:$0xf]  ;;  %s29_s0 = smov 64  }
   0x2   :  { %5 = vst [vmem:[#allocation1] sm:$0xf] %v4_v0 }
   0x9   :  { %v10_v1 = vld [vmem:[#allocation1 + $0x2] sm:$0x1]   ;;  %v6_v2 = vld [vmem:[#allocation1] sm:$0x1]   ;;  %v16_v3 = vld [vmem:[#allocation1 + $0x1] sm:$0x1]  }
   0xa   :  { %11 = vrot.lane.b32.xlu0 %v10_v1, %s29_s0  ;;  %8 = vst.msk [vmem:[#allocation0] sm:$0x1] %vm7_vm0, %v6_v2  }
   0xe   :  { %17 = vrot.lane.b32.xlu0 %v16_v3, %s30_s8 }
  0x7c   :  { %v12_v4 = vpop.permute.xlu0 %11  }
  0x7d   :  { %14 = vst.msk [vmem:[#allocation0] sm:$0x1] %vm13_vm1, %v12_v4  }
  0x80   :  { %v18_v5 = vpop.permute.xlu0 %17  }
  0x81   :  { %20 = vst.msk [vmem:[#allocation0] sm:$0x1] %vm19_vm2, %v18_v5  }
  0x88   :  { %v24_v6 = vld [vmem:[#allocation0] sm:$0x1] }
  0x89   :  { %26 = vst [vmem:[%s48_s1] sm:$0x1] %v24_v6 }

// kernel: tile.58
= control target key start
LH: loop header
LB: loop body
LE: loop exit
PB: predicated region body
PF: predicated region fallthrough
CT: control target
= control target key end

     0   :  { %s22_s0 = inlined_call_operand.vmem [shape: f32[16], index: 0, kind: input, shape index: {}]   ;;  %s23_s1 = inlined_call_operand.vmem [shape: f32[3,16], index: 1, kind: output, shape index: {}]  }
   0x1   :  { %v4_v0 = vld [vmem:[%s22_s0] ss:$0 sm:$0xff] }
   0x2   :  { %5 = vst [vmem:[%s23_s1] sm:$0xf] %v4_v0 }

// kernel: tile.59
= control target key start
LH: loop header
LB: loop body
LE: loop exit
PB: predicated region body
PF: predicated region fallthrough
CT: control target
= control target key end

     0   :  { %vm7_vm0 = vcmask 130048   ;;  %s30_s8 = smov 16   ;;  %vm13_vm1 = vcmask 392448   ;;  %vm19_vm2 = vcmask 261248   ;;  %s47_s0 = inlined_call_operand.vmem [shape: f32[3,16], index: 0, kind: input, shape index: {}]   ;;  %s48_s1 = inlined_call_operand.vmem [shape: f32[48], index: 1, kind: output, shape index: {}]  }
   0x1   :  { %v4_v0 = vld [vmem:[%s47_s0] sm:$0xf]  ;;  %s29_s0 = smov 32  }
   0x2   :  { %5 = vst [vmem:[#allocation1] sm:$0xf] %v4_v0 }
   0x9   :  { %v10_v1 = vld [vmem:[#allocation1 + $0x2] sm:$0x1]   ;;  %v6_v2 = vld [vmem:[#allocation1] sm:$0x1]   ;;  %v16_v3 = vld [vmem:[#allocation1 + $0x1] sm:$0x1]  }
   0xa   :  { %11 = vrot.lane.b32.xlu0 %v10_v1, %s29_s0  ;;  %8 = vst.msk [vmem:[#allocation0] sm:$0x1] %vm7_vm0, %v6_v2  }
   0xe   :  { %17 = vrot.lane.b32.xlu0 %v16_v3, %s30_s8 }
  0x7c   :  { %v12_v4 = vpop.permute.xlu0 %11  }
  0x7d   :  { %14 = vst.msk [vmem:[#allocation0] sm:$0x1] %vm13_vm1, %v12_v4  }
  0x80   :  { %v18_v5 = vpop.permute.xlu0 %17  }
  0x81   :  { %20 = vst.msk [vmem:[#allocation0] sm:$0x1] %vm19_vm2, %v18_v5  }
  0x88   :  { %v24_v6 = vld [vmem:[#allocation0] sm:$0x1] }
  0x89   :  { %26 = vst [vmem:[%s48_s1] sm:$0x1] %v24_v6 }

// kernel: tile.68
= control target key start
LH: loop header
LB: loop body
LE: loop exit
PB: predicated region body
PF: predicated region fallthrough
CT: control target
= control target key end

     0   :  { %s22_s0 = inlined_call_operand.vmem [shape: f32[8], index: 0, kind: input, shape index: {}]   ;;  %s23_s1 = inlined_call_operand.vmem [shape: f32[3,8], index: 1, kind: output, shape index: {}]  }
   0x1   :  { %v4_v0 = vld [vmem:[%s22_s0] ss:$0 sm:$0xff] }
   0x2   :  { %5 = vst [vmem:[%s23_s1] sm:$0xf] %v4_v0 }

// kernel: tile.69
= control target key start
LH: loop header
LB: loop body
LE: loop exit
PB: predicated region body
PF: predicated region fallthrough
CT: control target
= control target key end

     0   :  { %vm7_vm0 = vcmask 64512   ;;  %s30_s8 = smov 8   ;;  %vm13_vm1 = vcmask 195712   ;;  %vm19_vm2 = vcmask 130112   ;;  %s47_s0 = inlined_call_operand.vmem [shape: f32[3,8], index: 0, kind: input, shape index: {}]   ;;  %s48_s1 = inlined_call_operand.vmem [shape: f32[24], index: 1, kind: output, shape index: {}]  }
   0x1   :  { %v4_v0 = vld [vmem:[%s47_s0] sm:$0xf]  ;;  %s29_s0 = smov 16  }
   0x2   :  { %5 = vst [vmem:[#allocation1] sm:$0xf] %v4_v0 }
   0x9   :  { %v10_v1 = vld [vmem:[#allocation1 + $0x2] sm:$0x1]   ;;  %v6_v2 = vld [vmem:[#allocation1] sm:$0x1]   ;;  %v16_v3 = vld [vmem:[#allocation1 + $0x1] sm:$0x1]  }
   0xa   :  { %11 = vrot.lane.b32.xlu0 %v10_v1, %s29_s0  ;;  %8 = vst.msk [vmem:[#allocation0] sm:$0x1] %vm7_vm0, %v6_v2  }
   0xe   :  { %17 = vrot.lane.b32.xlu0 %v16_v3, %s30_s8 }
  0x7c   :  { %v12_v4 = vpop.permute.xlu0 %11  }
  0x7d   :  { %14 = vst.msk [vmem:[#allocation0] sm:$0x1] %vm13_vm1, %v12_v4  }
  0x80   :  { %v18_v5 = vpop.permute.xlu0 %17  }
  0x81   :  { %20 = vst.msk [vmem:[#allocation0] sm:$0x1] %vm19_vm2, %v18_v5  }
  0x88   :  { %v24_v6 = vld [vmem:[#allocation0] sm:$0x1] }
  0x89   :  { %26 = vst [vmem:[%s48_s1] sm:$0x1] %v24_v6 }

// kernel: cae_forward.5
= control target key start
LH: loop header
LB: loop body
LE: loop exit
PB: predicated region body
PF: predicated region fallthrough
CT: control target
= control target key end

     0   :  { %v154_v34 = vlaneseq  ;;  %s364_s1 = inlined_call_operand.vmem [shape: bf16[128,128], index: 1, kind: input, shape index: {}]   ;;  %s365_s0 = inlined_call_operand.vmem [shape: bf16[32,128], index: 0, kind: input, shape index: {}]   ;;  %s366_s2 = inlined_call_operand.vmem [shape: f32[1,128], index: 2, kind: input, shape index: {}]   ;;  %s367_s3 = inlined_call_operand.vmem [shape: bf16[32,128], index: 3, kind: output, shape index: {0}]   ;;  %s368_s4 = inlined_call_operand.vmem [shape: f32[1,8,128], index: 4, kind: output, shape index: {1}]  }
   0x1   :  { %v287_v0 = vld [vmem:[%s364_s1] sm:$0xff]   ;;  %v288_v1 = vld [vmem:[%s364_s1 + $0x8] sm:$0xff]   ;;  %v289_v2 = vld [vmem:[%s364_s1 + $0x10] sm:$0xff]  }
   0x2   :  { %267 = vmatprep.subr.bf16.mxu0 %v287_v0  ;;  %v290_v3 = vld [vmem:[%s364_s1 + $0x18] sm:$0xff]   ;;  %v295_v4 = vld [vmem:[%s365_s0] sm:$0xff]   ;;  %v292_v6 = vld [vmem:[%s364_s1 + $0x28] sm:$0xff]   ;;  %v155_v39 = vshrl.u32 %v154_v34, 7 }
   0x3   :  { %268 = vmatpush3.bf16.msra.mxu0 %v287_v0  ;;  %283 = vmatprep.mubr.bf16.mxu0 %v295_v4  ;;  %v291_v5 = vld [vmem:[%s364_s1 + $0x20] sm:$0xff]   ;;  %v293_v7 = vld [vmem:[%s364_s1 + $0x30] sm:$0xff]   ;;  %v294_v8 = vld [vmem:[%s364_s1 + $0x38] sm:$0xff]  }
   0x4   :  { %269 = vmatprep.subr.bf16.mxu0 %v288_v1  ;;  %v296_v9 = vld [vmem:[%s365_s0 + $0x8] sm:$0xff]   ;;  %v227_v10 = vld [vmem:[%s366_s2] ss:$0 sm:$0xff]  ;;  %vm195_vm0 = vcmp.eq.s32.totalorder %v155_v39, 1  ;;  %vm194_vm1 = vcmp.eq.s32.totalorder %v155_v39, 0 }
   0x7   :  { %270 = vmatpush3.bf16.msra.mxu0 %v288_v1 }
   0x8   :  { %271 = vmatprep.subr.bf16.mxu0 %v289_v2 }
   0xb   :  { %272 = vmatpush3.bf16.msra.mxu0 %v289_v2 }
   0xc   :  { %273 = vmatprep.subr.bf16.mxu0 %v290_v3 }
   0xf   :  { %274 = vmatpush3.bf16.msra.mxu0 %v290_v3 }
  0x10   :  { %275 = vmatprep.subr.bf16.mxu0 %v291_v5 }
  0x13   :  { %276 = vmatpush3.bf16.msra.mxu0 %v291_v5 }
  0x14   :  { %277 = vmatprep.subr.bf16.mxu0 %v292_v6 }
  0x17   :  { %278 = vmatpush3.bf16.msra.mxu0 %v292_v6 }
  0x18   :  { %279 = vmatprep.subr.bf16.mxu0 %v293_v7 }
  0x1b   :  { %280 = vmatpush3.bf16.msra.mxu0 %v293_v7 }
  0x1c   :  { %281 = vmatprep.subr.bf16.mxu0 %v294_v8 }
  0x1f   :  { %282 = vmatpush3.bf16.msra.mxu0 %v294_v8 }
  0x22   :  { %284 = vmatmul.mubr.bf16.vlgmr.msra.gmra.mrb[0].mxu0 %v296_v9 }
  0xf5   :  { %v285_v11 = vpop.f32.mrb[0].mxu0 }
  0xf6   :  { %v139_v12 = vpop.f32.mrb[1].mxu0  ;;  %v148_v15 = vadd.f32 %v285_v11, %v227_v10 }
  0xf7   :  { %v140_v13 = vadd.f32 %v227_v10, %v139_v12  ;;  %v286_v14 = vpop.f32.mrb[2].mxu0 }
  0xf8   :  { %v151_v16 = vadd.f32 %v286_v14, %v227_v10  ;;  %v142_v17 = vpop.f32.mrb[3].mxu0  ;;  %v183_v24 = vmul.f32 %v148_v15, %v148_v15 }
  0xf9   :  { %v143_v18 = vadd.f32 %v227_v10, %v142_v17  ;;  %v181_v20 = vmul.f32 %v140_v13, %v140_v13 }
  0xfa   :  { %v254_v19 = vpack.c.bf16 %v151_v16, %v148_v15  ;;  %v184_v27 = vmul.f32 %v151_v16, %v151_v16 }
  0xfb   :  { %v172_v21 = vadd.f32 %v143_v18, %v140_v13  ;;  %v182_v22 = vmul.f32 %v143_v18, %v143_v18  ;;  %v249_v23 = vpack.c.bf16 %v143_v18, %v140_v13 }
  0xfc   :  { %256 = vst [vmem:[%s367_s3 + $0x8] sm:$0xff] %v254_v19  }
  0xfd   :  { %v173_v25 = vadd.f32 %v172_v21, %v148_v15  ;;  %v185_v26 = vadd.f32 %v182_v22, %v181_v20  ;;  %250 = vst [vmem:[%s367_s3] sm:$0xff] %v249_v23  }
  0xff   :  { %v174_v28 = vadd.f32 %v173_v25, %v151_v16  ;;  %v186_v29 = vadd.f32 %v185_v26, %v183_v24 }
 0x101   :  { %v175_v30 = vrot.slane %v174_v28, 4  ;;  %v187_v31 = vadd.f32 %v186_v29, %v184_v27 }
 0x103   :  { %v176_v32 = vadd.f32 %v175_v30, %v174_v28  ;;  %v188_v33 = vrot.slane %v187_v31, 4 }
 0x105   :  { %v177_v35 = vrot.slane %v176_v32, 2  ;;  %v189_v36 = vadd.f32 %v188_v33, %v187_v31 }
 0x107   :  { %v178_v37 = vadd.f32 %v177_v35, %v176_v32  ;;  %v190_v38 = vrot.slane %v189_v36, 2 }
 0x109   :  { %v191_v40 = vadd.f32 %v190_v38, %v189_v36  ;;  %v179_v41 = vrot.slane %v178_v37, 1 }
 0x10b   :  { %v192_v42 = vrot.slane %v191_v40, 1  ;;  %v180_v44 = vadd.f32 %v179_v41, %v178_v37 }
 0x10d   :  { %v193_v43 = vadd.f32 %v192_v42, %v191_v40 }
 0x10f   :  { %v196_v45 = vsel %vm195_vm0, %v193_v43, 0.0 }
 0x110   :  { %v197_v46 = vsel %vm194_vm1, %v180_v44, %v196_v45 }
 0x111   :  { %198 = vst [vmem:[%s368_s4] sm:$0xff] %v197_v46 }

// kernel: cae_forward.6
= control target key start
LH: loop header
LB: loop body
LE: loop exit
PB: predicated region body
PF: predicated region fallthrough
CT: control target
= control target key end

     0   :  { %v66_v0 = vlaneseq  ;;  %s546_s3 = inlined_call_operand.vmem [shape: bf16[128,128], index: 3, kind: input, shape index: {}]   ;;  %s547_s0 = inlined_call_operand.vmem [shape: bf16[32,128], index: 0, kind: input, shape index: {}]   ;;  %s548_s1 = inlined_call_operand.vmem [shape: f32[1,128], index: 1, kind: input, shape index: {}]   ;;  %s549_s2 = inlined_call_operand.vmem [shape: f32[1,128], index: 2, kind: input, shape index: {}]   ;;  %s550_s4 = inlined_call_operand.vmem [shape: f32[1,128], index: 4, kind: input, shape index: {}]   ;;  %s551_s5 = inlined_call_operand.vmem [shape: bf16[32,128], index: 5, kind: output, shape index: {0}]   ;;  %s552_s6 = inlined_call_operand.vmem [shape: f32[1,8,128], index: 6, kind: output, shape index: {1}]  }
   0x1   :  { %v394_v1 = vld [vmem:[%s546_s3] sm:$0xff]   ;;  %v395_v2 = vld [vmem:[%s546_s3 + $0x8] sm:$0xff]   ;;  %v396_v6 = vld [vmem:[%s546_s3 + $0x10] sm:$0xff]  }
   0x2   :  { %v443_v3 = vshrl.u32 %v66_v0, 7  ;;  %374 = vmatprep.subr.bf16.mxu0 %v394_v1  ;;  %v450_v11 = vand.u32 127, %v66_v0  ;;  %v397_v12 = vld [vmem:[%s546_s3 + $0x18] sm:$0xff]   ;;  %v345_v13 = vld [vmem:[%s547_s0] sm:$0xff]   ;;  %v362_v18 = vld [vmem:[%s547_s0 + $0x8] sm:$0xff]  }
   0x3   :  { %375 = vmatpush3.bf16.msra.mxu0 %v394_v1  ;;  %v315_v14 = vld [vmem:[%s548_s1] ss:$0 sm:$0xff]  ;;  %v346_v16 = vunpack.c.l.bf16 %v345_v13  ;;  %v347_v17 = vunpack.c.h.bf16 %v345_v13  ;;  %v350_v27 = vunpack.c.l.bf16 %v362_v18  ;;  %v351_v31 = vunpack.c.h.bf16 %v362_v18  ;;  %v399_v40 = vld [vmem:[%s546_s3 + $0x28] sm:$0xff]   ;;  %v400_v49 = vld [vmem:[%s546_s3 + $0x30] sm:$0xff]  }
   0x4   :  { %v68_v4 = vadd.s32 8, %v443_v3  ;;  %v76_v5 = vcvt.s32.f32 %v443_v3  ;;  %376 = vmatprep.subr.bf16.mxu0 %v395_v2  ;;  %v69_v15 = vadd.s32 16, %v443_v3  ;;  %v316_v19 = vld [vmem:[%s549_s2] ss:$0 sm:$0xff]  ;;  %v70_v22 = vadd.s32 24, %v443_v3  ;;  %v401_v57 = vld [vmem:[%s546_s3 + $0x38] sm:$0xff]  }
   0x5   :  { %v39_v24 = vmul.f32 %v346_v16, %v315_v14  ;;  %v40_v25 = vmul.f32 %v347_v17, %v315_v14  ;;  %vm103_vm0 = vcmp.lt.s32.totalorder %v450_v11, 32  ;;  %vm112_vm1 = vcmp.ge.s32.totalorder %v450_v11, 64  ;;  %v398_v26 = vld [vmem:[%s546_s3 + $0x20] sm:$0xff]  }
   0x6   :  { %v77_v7 = vcvt.s32.f32 %v68_v4  ;;  %v81_v8 = vmul.f32 0.0625, %v76_v5  ;;  %v78_v23 = vcvt.s32.f32 %v69_v15  ;;  %v79_v30 = vcvt.s32.f32 %v70_v22  ;;  %v317_v0 = vld [vmem:[%s550_s4] ss:$0 sm:$0xff] }
   0x7   :  { %377 = vmatpush3.bf16.msra.mxu0 %v395_v2  ;;  %v50_v32 = vadd.f32 %v316_v19, %v39_v24  ;;  %v51_v33 = vadd.f32 %v316_v19, %v40_v25  ;;  %vm117_vm5 = vcmp.lt.s32.totalorder %v450_v11, 96  ;;  %v41_v42 = vmul.f32 %v350_v27, %v315_v14 }
   0x8   :  { %v82_v9 = vmul.f32 0.0625, %v77_v7  ;;  %v85_v10 = vfloor.f32 %v81_v8  ;;  %378 = vmatprep.subr.bf16.mxu0 %v396_v6  ;;  %v83_v34 = vmul.f32 0.0625, %v78_v23  ;;  %v84_v36 = vmul.f32 0.0625, %v79_v30 }
   0x9   :  { %v58_v37 = vmul.f32 0.2, %v50_v32  ;;  %v59_v38 = vmul.f32 0.2, %v51_v33  ;;  %vm54_vm6 = vcmp.ge.f32.partialorder %v50_v32, 0.0  ;;  %vm55_vm7 = vcmp.ge.f32.partialorder %v51_v33, 0.0 }
   0xa   :  { %v86_v20 = vfloor.f32 %v82_v9  ;;  %v89_v21 = vmul.f32 16.0, %v85_v10  ;;  %v42_v43 = vmul.f32 %v351_v31, %v315_v14  ;;  %v87_v44 = vfloor.f32 %v83_v34 }
   0xb   :  { %379 = vmatpush3.bf16.msra.mxu0 %v396_v6  ;;  %v88_v45 = vfloor.f32 %v84_v36  ;;  %v62_v46 = vsel %vm54_vm6, %v50_v32, %v58_v37  ;;  %v63_v47 = vsel %vm55_vm7, %v51_v33, %v59_v38  ;;  %v52_v52 = vadd.f32 %v316_v19, %v41_v42 }
   0xc   :  { %380 = vmatprep.subr.bf16.mxu0 %v397_v12  ;;  %v90_v28 = vmul.f32 16.0, %v86_v20  ;;  %v93_v29 = vsub.f32 %v76_v5, %v89_v21  ;;  %v91_v50 = vmul.f32 16.0, %v87_v44  ;;  %v329_v53 = vpack.c.bf16 %v63_v47, %v62_v46 }
   0xd   :  { %v92_v51 = vmul.f32 16.0, %v88_v45  ;;  %v53_v54 = vadd.f32 %v316_v19, %v42_v43  ;;  %v60_v58 = vmul.f32 0.2, %v52_v52 }
   0xe   :  { %v94_v35 = vsub.f32 %v77_v7, %v90_v28  ;;  %vm99_vm2 = vcmp.lt.f32.partialorder %v93_v29, 0.5  ;;  %vm108_vm3 = vcmp.gt.f32.partialorder %v93_v29, 14.5  ;;  %v95_v55 = vsub.f32 %v78_v23, %v91_v50 }
   0xf   :  { %381 = vmatpush3.bf16.msra.mxu0 %v397_v12  ;;  %vm476_vm4 = vmand %vm99_vm2, %vm103_vm0  ;;  %v96_v56 = vsub.f32 %v79_v30, %v92_v51  ;;  %v61_v59 = vmul.f32 0.2, %v53_v54 }
  0x10   :  { %382 = vmatprep.subr.bf16.mxu0 %v398_v26  ;;  %vm100_vm8 = vcmp.lt.f32.partialorder %v94_v35, 0.5  ;;  %vm109_vm9 = vcmp.gt.f32.partialorder %v94_v35, 14.5  ;;  %vm113_vm10 = vmand %vm108_vm3, %vm112_vm1  ;;  %vm101_vm7 = vcmp.lt.f32.partialorder %v95_v55, 0.5 }
  0x11   :  { %vm488_vm11 = vmand %vm100_vm8, %vm103_vm0  ;;  %vm102_vm8 = vcmp.lt.f32.partialorder %v96_v56, 0.5 }
  0x12   :  { %vm114_vm12 = vmand %vm109_vm9, %vm112_vm1 }
  0x13   :  { %383 = vmatpush3.bf16.msra.mxu0 %v398_v26  ;;  %vm496_vm13 = vmand %vm113_vm10, %vm117_vm5 }
  0x14   :  { %384 = vmatprep.subr.bf16.mxu0 %v399_v40  ;;  %vm119_vm14 = vmand %vm114_vm12, %vm117_vm5  ;;  %vm56_vm12 = vcmp.ge.f32.partialorder %v52_v52, 0.0 }
  0x15   :  { %vm122_vm15 = vmor %vm476_vm4, %vm496_vm13  ;;  %vm110_vm4 = vcmp.gt.f32.partialorder %v95_v55, 14.5  ;;  %vm57_vm13 = vcmp.ge.f32.partialorder %v53_v54, 0.0  ;;  %v64_v61 = vsel %vm56_vm12, %v52_v52, %v60_v58 }
  0x16   :  { %vm123_vm2 = vmor %vm488_vm11, %vm119_vm14  ;;  %vm111_vm11 = vcmp.gt.f32.partialorder %v96_v56, 14.5  ;;  %v65_v62 = vsel %vm57_vm13, %v53_v54, %v61_v59 }
  0x17   :  { %385 = vmatpush3.bf16.msra.mxu0 %v399_v40  ;;  %vm326_vm3 = vmneg %vm123_vm2  ;;  %v334_v63 = vpack.c.bf16 %v65_v62, %v64_v61 }
  0x18   :  { %386 = vmatprep.subr.bf16.mxu0 %v400_v49  ;;  %vm327_vm6 = vmneg %vm122_vm15 }
  0x19   :  { %vm328_vm9 = vmpackc.low %vm326_vm3, %vm327_vm6 }
  0x1a   :  { %390 = vmatprep.mubr.msk.bf16.mxu0 %vm328_vm9, %v329_v53  ;;  %vm516_vm10 = vmand %vm101_vm7, %vm103_vm0 }
  0x1b   :  { %387 = vmatpush3.bf16.msra.mxu0 %v400_v49  ;;  %vm107_vm14 = vmand %vm102_vm8, %vm103_vm0 }
  0x1c   :  { %388 = vmatprep.subr.bf16.mxu0 %v401_v57  ;;  %vm115_vm15 = vmand %vm110_vm4, %vm112_vm1 }
  0x1d   :  { %vm116_vm2 = vmand %vm111_vm11, %vm112_vm1  ;;  %vm283_vm1 = vcmp.eq.s32.totalorder %v443_v3, 1 }
  0x1e   :  { %vm120_vm3 = vmand %vm115_vm15, %vm117_vm5 }
  0x1f   :  { %389 = vmatpush3.bf16.msra.mxu0 %v401_v57  ;;  %vm121_vm6 = vmand %vm116_vm2, %vm117_vm5  ;;  %vm282_vm5 = vcmp.eq.s32.totalorder %v443_v3, 0 }
  0x20   :  { %vm124_vm7 = vmor %vm516_vm10, %vm120_vm3 }
  0x21   :  { %vm125_vm0 = vmor %vm107_vm14, %vm121_vm6 }
  0x22   :  { %vm331_vm8 = vmneg %vm125_vm0 }
  0x23   :  { %vm332_vm9 = vmneg %vm124_vm7 }
  0x24   :  { %vm333_vm4 = vmpackc.low %vm331_vm8, %vm332_vm9 }
  0x25   :  { %391 = vmatmul.mubr.msk.bf16.vlgmr.msra.gmra.mrb[0].mxu0 %vm333_vm4, %v334_v63 }
  0xf8   :  { %v392_v1 = vpop.f32.mrb[0].mxu0 }
  0xf9   :  { %v237_v2 = vpop.f32.mrb[1].mxu0  ;;  %v246_v6 = vadd.f32 %v392_v1, %v317_v0 }
  0xfa   :  { %v238_v4 = vadd.f32 %v317_v0, %v237_v2  ;;  %v393_v5 = vpop.f32.mrb[2].mxu0 }
  0xfb   :  { %v249_v7 = vadd.f32 %v393_v5, %v317_v0  ;;  %v240_v8 = vpop.f32.mrb[3].mxu0  ;;  %v271_v15 = vmul.f32 %v246_v6, %v246_v6 }
  0xfc   :  { %v241_v9 = vadd.f32 %v317_v0, %v240_v8  ;;  %v269_v11 = vmul.f32 %v238_v4, %v238_v4 }
  0xfd   :  { %v360_v10 = vpack.c.bf16 %v249_v7, %v246_v6  ;;  %v272_v18 = vmul.f32 %v249_v7, %v249_v7 }
  0xfe   :  { %v260_v12 = vadd.f32 %v241_v9, %v238_v4  ;;  %v270_v13 = vmul.f32 %v241_v9, %v241_v9  ;;  %v355_v14 = vpack.c.bf16 %v241_v9, %v238_v4 }
  0xff   :  { %363 = vst [vmem:[%s551_s5 + $0x8] sm:$0xff] %v360_v10  }
 0x100   :  { %v261_v16 = vadd.f32 %v260_v12, %v246_v6  ;;  %v273_v17 = vadd.f32 %v270_v13, %v269_v11  ;;  %356 = vst [vmem:[%s551_s5] sm:$0xff] %v355_v14  }
 0x102   :  { %v262_v19 = vadd.f32 %v261_v16, %v249_v7  ;;  %v274_v20 = vadd.f32 %v273_v17, %v271_v15 }
 0x104   :  { %v263_v21 = vrot.slane %v262_v19, 4  ;;  %v275_v22 = vadd.f32 %v274_v20, %v272_v18 }
 0x106   :  { %v264_v23 = vadd.f32 %v263_v21, %v262_v19  ;;  %v276_v24 = vrot.slane %v275_v22, 4 }
 0x108   :  { %v265_v25 = vrot.slane %v264_v23, 2  ;;  %v277_v26 = vadd.f32 %v276_v24, %v275_v22 }
 0x10a   :  { %v266_v27 = vadd.f32 %v265_v25, %v264_v23  ;;  %v278_v28 = vrot.slane %v277_v26, 2 }
 0x10c   :  { %v279_v29 = vadd.f32 %v278_v28, %v277_v26  ;;  %v267_v30 = vrot.slane %v266_v27, 1 }
 0x10e   :  { %v280_v31 = vrot.slane %v279_v29, 1  ;;  %v268_v33 = vadd.f32 %v267_v30, %v266_v27 }
 0x110   :  { %v281_v32 = vadd.f32 %v280_v31, %v279_v29 }
 0x112   :  { %v284_v34 = vsel %vm283_vm1, %v281_v32, 0.0 }
 0x113   :  { %v285_v35 = vsel %vm282_vm5, %v268_v33, %v284_v34 }
 0x114   :  { %286 = vst [vmem:[%s552_s6] sm:$0xff] %v285_v35 }

// kernel: cae_forward.7
= control target key start
LH: loop header
LB: loop body
LE: loop exit
PB: predicated region body
PF: predicated region fallthrough
CT: control target
= control target key end

     0   :  { %v66_v0 = vlaneseq  ;;  %s546_s3 = inlined_call_operand.vmem [shape: bf16[128,128], index: 3, kind: input, shape index: {}]   ;;  %s547_s0 = inlined_call_operand.vmem [shape: bf16[32,128], index: 0, kind: input, shape index: {}]   ;;  %s548_s1 = inlined_call_operand.vmem [shape: f32[1,128], index: 1, kind: input, shape index: {}]   ;;  %s549_s2 = inlined_call_operand.vmem [shape: f32[1,128], index: 2, kind: input, shape index: {}]   ;;  %s550_s4 = inlined_call_operand.vmem [shape: f32[1,128], index: 4, kind: input, shape index: {}]   ;;  %s551_s5 = inlined_call_operand.vmem [shape: bf16[32,128], index: 5, kind: output, shape index: {0}]   ;;  %s552_s6 = inlined_call_operand.vmem [shape: f32[1,8,128], index: 6, kind: output, shape index: {1}]  }
   0x1   :  { %v394_v1 = vld [vmem:[%s546_s3] sm:$0xff]   ;;  %v395_v2 = vld [vmem:[%s546_s3 + $0x8] sm:$0xff]   ;;  %v396_v6 = vld [vmem:[%s546_s3 + $0x10] sm:$0xff]  }
   0x2   :  { %v443_v3 = vshrl.u32 %v66_v0, 7  ;;  %374 = vmatprep.subr.bf16.mxu0 %v394_v1  ;;  %v450_v11 = vand.u32 127, %v66_v0  ;;  %v397_v12 = vld [vmem:[%s546_s3 + $0x18] sm:$0xff]   ;;  %v345_v13 = vld [vmem:[%s547_s0] sm:$0xff]   ;;  %v362_v18 = vld [vmem:[%s547_s0 + $0x8] sm:$0xff]  }
   0x3   :  { %375 = vmatpush3.bf16.msra.mxu0 %v394_v1  ;;  %v315_v14 = vld [vmem:[%s548_s1] ss:$0 sm:$0xff]  ;;  %v346_v16 = vunpack.c.l.bf16 %v345_v13  ;;  %v347_v17 = vunpack.c.h.bf16 %v345_v13  ;;  %v350_v27 = vunpack.c.l.bf16 %v362_v18  ;;  %v351_v31 = vunpack.c.h.bf16 %v362_v18  ;;  %v399_v40 = vld [vmem:[%s546_s3 + $0x28] sm:$0xff]   ;;  %v400_v49 = vld [vmem:[%s546_s3 + $0x30] sm:$0xff]  }
   0x4   :  { %v68_v4 = vadd.s32 8, %v443_v3  ;;  %v76_v5 = vcvt.s32.f32 %v443_v3  ;;  %376 = vmatprep.subr.bf16.mxu0 %v395_v2  ;;  %v69_v15 = vadd.s32 16, %v443_v3  ;;  %v316_v19 = vld [vmem:[%s549_s2] ss:$0 sm:$0xff]  ;;  %v70_v22 = vadd.s32 24, %v443_v3  ;;  %v401_v57 = vld [vmem:[%s546_s3 + $0x38] sm:$0xff]  }
   0x5   :  { %v39_v24 = vmul.f32 %v346_v16, %v315_v14  ;;  %v40_v25 = vmul.f32 %v347_v17, %v315_v14  ;;  %vm103_vm0 = vcmp.lt.s32.totalorder %v450_v11, 16  ;;  %vm112_vm1 = vcmp.ge.s32.totalorder %v450_v11, 32  ;;  %v398_v26 = vld [vmem:[%s546_s3 + $0x20] sm:$0xff]  }
   0x6   :  { %v77_v7 = vcvt.s32.f32 %v68_v4  ;;  %v81_v8 = vmul.f32 0.0625, %v76_v5  ;;  %v78_v23 = vcvt.s32.f32 %v69_v15  ;;  %v79_v30 = vcvt.s32.f32 %v70_v22  ;;  %v317_v0 = vld [vmem:[%s550_s4] ss:$0 sm:$0xff] }
   0x7   :  { %377 = vmatpush3.bf16.msra.mxu0 %v395_v2  ;;  %v50_v32 = vadd.f32 %v316_v19, %v39_v24  ;;  %v51_v33 = vadd.f32 %v316_v19, %v40_v25  ;;  %vm117_vm5 = vcmp.lt.s32.totalorder %v450_v11, 48  ;;  %v41_v42 = vmul.f32 %v350_v27, %v315_v14 }
   0x8   :  { %v82_v9 = vmul.f32 0.0625, %v77_v7  ;;  %v85_v10 = vfloor.f32 %v81_v8  ;;  %378 = vmatprep.subr.bf16.mxu0 %v396_v6  ;;  %v83_v34 = vmul.f32 0.0625, %v78_v23  ;;  %v84_v36 = vmul.f32 0.0625, %v79_v30 }
   0x9   :  { %v58_v37 = vmul.f32 0.2, %v50_v32  ;;  %v59_v38 = vmul.f32 0.2, %v51_v33  ;;  %vm54_vm6 = vcmp.ge.f32.partialorder %v50_v32, 0.0  ;;  %vm55_vm7 = vcmp.ge.f32.partialorder %v51_v33, 0.0 }
   0xa   :  { %v86_v20 = vfloor.f32 %v82_v9  ;;  %v89_v21 = vmul.f32 16.0, %v85_v10  ;;  %v42_v43 = vmul.f32 %v351_v31, %v315_v14  ;;  %v87_v44 = vfloor.f32 %v83_v34 }
   0xb   :  { %379 = vmatpush3.bf16.msra.mxu0 %v396_v6  ;;  %v88_v45 = vfloor.f32 %v84_v36  ;;  %v62_v46 = vsel %vm54_vm6, %v50_v32, %v58_v37  ;;  %v63_v47 = vsel %vm55_vm7, %v51_v33, %v59_v38  ;;  %v52_v52 = vadd.f32 %v316_v19, %v41_v42 }
   0xc   :  { %380 = vmatprep.subr.bf16.mxu0 %v397_v12  ;;  %v90_v28 = vmul.f32 16.0, %v86_v20  ;;  %v93_v29 = vsub.f32 %v76_v5, %v89_v21  ;;  %v91_v50 = vmul.f32 16.0, %v87_v44  ;;  %v329_v53 = vpack.c.bf16 %v63_v47, %v62_v46 }
   0xd   :  { %v92_v51 = vmul.f32 16.0, %v88_v45  ;;  %v53_v54 = vadd.f32 %v316_v19, %v42_v43  ;;  %v60_v58 = vmul.f32 0.2, %v52_v52 }
   0xe   :  { %v94_v35 = vsub.f32 %v77_v7, %v90_v28  ;;  %vm99_vm2 = vcmp.lt.f32.partialorder %v93_v29, 0.5  ;;  %vm108_vm3 = vcmp.gt.f32.partialorder %v93_v29, 14.5  ;;  %v95_v55 = vsub.f32 %v78_v23, %v91_v50 }
   0xf   :  { %381 = vmatpush3.bf16.msra.mxu0 %v397_v12  ;;  %vm476_vm4 = vmand %vm99_vm2, %vm103_vm0  ;;  %v96_v56 = vsub.f32 %v79_v30, %v92_v51  ;;  %v61_v59 = vmul.f32 0.2, %v53_v54 }
  0x10   :  { %382 = vmatprep.subr.bf16.mxu0 %v398_v26  ;;  %vm100_vm8 = vcmp.lt.f32.partialorder %v94_v35, 0.5  ;;  %vm109_vm9 = vcmp.gt.f32.partialorder %v94_v35, 14.5  ;;  %vm113_vm10 = vmand %vm108_vm3, %vm112_vm1  ;;  %vm101_vm7 = vcmp.lt.f32.partialorder %v95_v55, 0.5 }
  0x11   :  { %vm488_vm11 = vmand %vm100_vm8, %vm103_vm0  ;;  %vm102_vm8 = vcmp.lt.f32.partialorder %v96_v56, 0.5 }
  0x12   :  { %vm114_vm12 = vmand %vm109_vm9, %vm112_vm1 }
  0x13   :  { %383 = vmatpush3.bf16.msra.mxu0 %v398_v26  ;;  %vm496_vm13 = vmand %vm113_vm10, %vm117_vm5 }
  0x14   :  { %384 = vmatprep.subr.bf16.mxu0 %v399_v40  ;;  %vm119_vm14 = vmand %vm114_vm12, %vm117_vm5  ;;  %vm56_vm12 = vcmp.ge.f32.partialorder %v52_v52, 0.0 }
  0x15   :  { %vm122_vm15 = vmor %vm476_vm4, %vm496_vm13  ;;  %vm110_vm4 = vcmp.gt.f32.partialorder %v95_v55, 14.5  ;;  %vm57_vm13 = vcmp.ge.f32.partialorder %v53_v54, 0.0  ;;  %v64_v61 = vsel %vm56_vm12, %v52_v52, %v60_v58 }
  0x16   :  { %vm123_vm2 = vmor %vm488_vm11, %vm119_vm14  ;;  %vm111_vm11 = vcmp.gt.f32.partialorder %v96_v56, 14.5  ;;  %v65_v62 = vsel %vm57_vm13, %v53_v54, %v61_v59 }
  0x17   :  { %385 = vmatpush3.bf16.msra.mxu0 %v399_v40  ;;  %vm326_vm3 = vmneg %vm123_vm2  ;;  %v334_v63 = vpack.c.bf16 %v65_v62, %v64_v61 }
  0x18   :  { %386 = vmatprep.subr.bf16.mxu0 %v400_v49  ;;  %vm327_vm6 = vmneg %vm122_vm15 }
  0x19   :  { %vm328_vm9 = vmpackc.low %vm326_vm3, %vm327_vm6 }
  0x1a   :  { %390 = vmatprep.mubr.msk.bf16.mxu0 %vm328_vm9, %v329_v53  ;;  %vm516_vm10 = vmand %vm101_vm7, %vm103_vm0 }
  0x1b   :  { %387 = vmatpush3.bf16.msra.mxu0 %v400_v49  ;;  %vm107_vm14 = vmand %vm102_vm8, %vm103_vm0 }
  0x1c   :  { %388 = vmatprep.subr.bf16.mxu0 %v401_v57  ;;  %vm115_vm15 = vmand %vm110_vm4, %vm112_vm1 }
  0x1d   :  { %vm116_vm2 = vmand %vm111_vm11, %vm112_vm1  ;;  %vm283_vm1 = vcmp.eq.s32.totalorder %v443_v3, 1 }
  0x1e   :  { %vm120_vm3 = vmand %vm115_vm15, %vm117_vm5 }
  0x1f   :  { %389 = vmatpush3.bf16.msra.mxu0 %v401_v57  ;;  %vm121_vm6 = vmand %vm116_vm2, %vm117_vm5  ;;  %vm282_vm5 = vcmp.eq.s32.totalorder %v443_v3, 0 }
  0x20   :  { %vm124_vm7 = vmor %vm516_vm10, %vm120_vm3 }
  0x21   :  { %vm125_vm0 = vmor %vm107_vm14, %vm121_vm6 }
  0x22   :  { %vm331_vm8 = vmneg %vm125_vm0 }
  0x23   :  { %vm332_vm9 = vmneg %vm124_vm7 }
  0x24   :  { %vm333_vm4 = vmpackc.low %vm331_vm8, %vm332_vm9 }
  0x25   :  { %391 = vmatmul.mubr.msk.bf16.vlgmr.msra.gmra.mrb[0].mxu0 %vm333_vm4, %v334_v63 }
  0xf8   :  { %v392_v1 = vpop.f32.mrb[0].mxu0 }
  0xf9   :  { %v237_v2 = vpop.f32.mrb[1].mxu0  ;;  %v246_v6 = vadd.f32 %v392_v1, %v317_v0 }
  0xfa   :  { %v238_v4 = vadd.f32 %v317_v0, %v237_v2  ;;  %v393_v5 = vpop.f32.mrb[2].mxu0 }
  0xfb   :  { %v249_v7 = vadd.f32 %v393_v5, %v317_v0  ;;  %v240_v8 = vpop.f32.mrb[3].mxu0  ;;  %v271_v15 = vmul.f32 %v246_v6, %v246_v6 }
  0xfc   :  { %v241_v9 = vadd.f32 %v317_v0, %v240_v8  ;;  %v269_v11 = vmul.f32 %v238_v4, %v238_v4 }
  0xfd   :  { %v360_v10 = vpack.c.bf16 %v249_v7, %v246_v6  ;;  %v272_v18 = vmul.f32 %v249_v7, %v249_v7 }
  0xfe   :  { %v260_v12 = vadd.f32 %v241_v9, %v238_v4  ;;  %v270_v13 = vmul.f32 %v241_v9, %v241_v9  ;;  %v355_v14 = vpack.c.bf16 %v241_v9, %v238_v4 }
  0xff   :  { %363 = vst [vmem:[%s551_s5 + $0x8] sm:$0xff] %v360_v10  }
 0x100   :  { %v261_v16 = vadd.f32 %v260_v12, %v246_v6  ;;  %v273_v17 = vadd.f32 %v270_v13, %v269_v11  ;;  %356 = vst [vmem:[%s551_s5] sm:$0xff] %v355_v14  }
 0x102   :  { %v262_v19 = vadd.f32 %v261_v16, %v249_v7  ;;  %v274_v20 = vadd.f32 %v273_v17, %v271_v15 }
 0x104   :  { %v263_v21 = vrot.slane %v262_v19, 4  ;;  %v275_v22 = vadd.f32 %v274_v20, %v272_v18 }
 0x106   :  { %v264_v23 = vadd.f32 %v263_v21, %v262_v19  ;;  %v276_v24 = vrot.slane %v275_v22, 4 }
 0x108   :  { %v265_v25 = vrot.slane %v264_v23, 2  ;;  %v277_v26 = vadd.f32 %v276_v24, %v275_v22 }
 0x10a   :  { %v266_v27 = vadd.f32 %v265_v25, %v264_v23  ;;  %v278_v28 = vrot.slane %v277_v26, 2 }
 0x10c   :  { %v279_v29 = vadd.f32 %v278_v28, %v277_v26  ;;  %v267_v30 = vrot.slane %v266_v27, 1 }
 0x10e   :  { %v280_v31 = vrot.slane %v279_v29, 1  ;;  %v268_v33 = vadd.f32 %v267_v30, %v266_v27 }
 0x110   :  { %v281_v32 = vadd.f32 %v280_v31, %v279_v29 }
 0x112   :  { %v284_v34 = vsel %vm283_vm1, %v281_v32, 0.0 }
 0x113   :  { %v285_v35 = vsel %vm282_vm5, %v268_v33, %v284_v34 }
 0x114   :  { %286 = vst [vmem:[%s552_s6] sm:$0xff] %v285_v35 }

// kernel: cae_forward.8
= control target key start
LH: loop header
LB: loop body
LE: loop exit
PB: predicated region body
PF: predicated region fallthrough
CT: control target
= control target key end

     0   :  { %v66_v0 = vlaneseq  ;;  %s546_s3 = inlined_call_operand.vmem [shape: bf16[128,128], index: 3, kind: input, shape index: {}]   ;;  %s547_s0 = inlined_call_operand.vmem [shape: bf16[32,128], index: 0, kind: input, shape index: {}]   ;;  %s548_s1 = inlined_call_operand.vmem [shape: f32[1,128], index: 1, kind: input, shape index: {}]   ;;  %s549_s2 = inlined_call_operand.vmem [shape: f32[1,128], index: 2, kind: input, shape index: {}]   ;;  %s550_s4 = inlined_call_operand.vmem [shape: f32[1,128], index: 4, kind: input, shape index: {}]   ;;  %s551_s5 = inlined_call_operand.vmem [shape: bf16[32,128], index: 5, kind: output, shape index: {0}]   ;;  %s552_s6 = inlined_call_operand.vmem [shape: f32[1,8,128], index: 6, kind: output, shape index: {1}]  }
   0x1   :  { %v394_v1 = vld [vmem:[%s546_s3] sm:$0xff]   ;;  %v395_v2 = vld [vmem:[%s546_s3 + $0x8] sm:$0xff]   ;;  %v396_v6 = vld [vmem:[%s546_s3 + $0x10] sm:$0xff]  }
   0x2   :  { %v443_v3 = vshrl.u32 %v66_v0, 7  ;;  %374 = vmatprep.subr.bf16.mxu0 %v394_v1  ;;  %v450_v11 = vand.u32 127, %v66_v0  ;;  %v397_v12 = vld [vmem:[%s546_s3 + $0x18] sm:$0xff]   ;;  %v345_v13 = vld [vmem:[%s547_s0] sm:$0xff]   ;;  %v362_v18 = vld [vmem:[%s547_s0 + $0x8] sm:$0xff]  }
   0x3   :  { %375 = vmatpush3.bf16.msra.mxu0 %v394_v1  ;;  %v315_v14 = vld [vmem:[%s548_s1] ss:$0 sm:$0xff]  ;;  %v346_v16 = vunpack.c.l.bf16 %v345_v13  ;;  %v347_v17 = vunpack.c.h.bf16 %v345_v13  ;;  %v350_v27 = vunpack.c.l.bf16 %v362_v18  ;;  %v351_v31 = vunpack.c.h.bf16 %v362_v18  ;;  %v399_v40 = vld [vmem:[%s546_s3 + $0x28] sm:$0xff]   ;;  %v400_v49 = vld [vmem:[%s546_s3 + $0x30] sm:$0xff]  }
   0x4   :  { %v68_v4 = vadd.s32 8, %v443_v3  ;;  %v76_v5 = vcvt.s32.f32 %v443_v3  ;;  %376 = vmatprep.subr.bf16.mxu0 %v395_v2  ;;  %v69_v15 = vadd.s32 16, %v443_v3  ;;  %v316_v19 = vld [vmem:[%s549_s2] ss:$0 sm:$0xff]  ;;  %v70_v22 = vadd.s32 24, %v443_v3  ;;  %v401_v57 = vld [vmem:[%s546_s3 + $0x38] sm:$0xff]  }
   0x5   :  { %v39_v24 = vmul.f32 %v346_v16, %v315_v14  ;;  %v40_v25 = vmul.f32 %v347_v17, %v315_v14  ;;  %vm103_vm0 = vcmp.lt.s32.totalorder %v450_v11, 8  ;;  %vm112_vm1 = vcmp.ge.s32.totalorder %v450_v11, 16  ;;  %v398_v26 = vld [vmem:[%s546_s3 + $0x20] sm:$0xff]  }
   0x6   :  { %v77_v7 = vcvt.s32.f32 %v68_v4  ;;  %v81_v8 = vmul.f32 0.0625, %v76_v5  ;;  %v78_v23 = vcvt.s32.f32 %v69_v15  ;;  %v79_v30 = vcvt.s32.f32 %v70_v22  ;;  %v317_v0 = vld [vmem:[%s550_s4] ss:$0 sm:$0xff] }
   0x7   :  { %377 = vmatpush3.bf16.msra.mxu0 %v395_v2  ;;  %v50_v32 = vadd.f32 %v316_v19, %v39_v24  ;;  %v51_v33 = vadd.f32 %v316_v19, %v40_v25  ;;  %vm117_vm5 = vcmp.lt.s32.totalorder %v450_v11, 24  ;;  %v41_v42 = vmul.f32 %v350_v27, %v315_v14 }
   0x8   :  { %v82_v9 = vmul.f32 0.0625, %v77_v7  ;;  %v85_v10 = vfloor.f32 %v81_v8  ;;  %378 = vmatprep.subr.bf16.mxu0 %v396_v6  ;;  %v83_v34 = vmul.f32 0.0625, %v78_v23  ;;  %v84_v36 = vmul.f32 0.0625, %v79_v30 }
   0x9   :  { %v58_v37 = vmul.f32 0.2, %v50_v32  ;;  %v59_v38 = vmul.f32 0.2, %v51_v33  ;;  %vm54_vm6 = vcmp.ge.f32.partialorder %v50_v32, 0.0  ;;  %vm55_vm7 = vcmp.ge.f32.partialorder %v51_v33, 0.0 }
   0xa   :  { %v86_v20 = vfloor.f32 %v82_v9  ;;  %v89_v21 = vmul.f32 16.0, %v85_v10  ;;  %v42_v43 = vmul.f32 %v351_v31, %v315_v14  ;;  %v87_v44 = vfloor.f32 %v83_v34 }
   0xb   :  { %379 = vmatpush3.bf16.msra.mxu0 %v396_v6  ;;  %v88_v45 = vfloor.f32 %v84_v36  ;;  %v62_v46 = vsel %vm54_vm6, %v50_v32, %v58_v37  ;;  %v63_v47 = vsel %vm55_vm7, %v51_v33, %v59_v38  ;;  %v52_v52 = vadd.f32 %v316_v19, %v41_v42 }
   0xc   :  { %380 = vmatprep.subr.bf16.mxu0 %v397_v12  ;;  %v90_v28 = vmul.f32 16.0, %v86_v20  ;;  %v93_v29 = vsub.f32 %v76_v5, %v89_v21  ;;  %v91_v50 = vmul.f32 16.0, %v87_v44  ;;  %v329_v53 = vpack.c.bf16 %v63_v47, %v62_v46 }
   0xd   :  { %v92_v51 = vmul.f32 16.0, %v88_v45  ;;  %v53_v54 = vadd.f32 %v316_v19, %v42_v43  ;;  %v60_v58 = vmul.f32 0.2, %v52_v52 }
   0xe   :  { %v94_v35 = vsub.f32 %v77_v7, %v90_v28  ;;  %vm99_vm2 = vcmp.lt.f32.partialorder %v93_v29, 0.5  ;;  %vm108_vm3 = vcmp.gt.f32.partialorder %v93_v29, 14.5  ;;  %v95_v55 = vsub.f32 %v78_v23, %v91_v50 }
   0xf   :  { %381 = vmatpush3.bf16.msra.mxu0 %v397_v12  ;;  %vm476_vm4 = vmand %vm99_vm2, %vm103_vm0  ;;  %v96_v56 = vsub.f32 %v79_v30, %v92_v51  ;;  %v61_v59 = vmul.f32 0.2, %v53_v54 }
  0x10   :  { %382 = vmatprep.subr.bf16.mxu0 %v398_v26  ;;  %vm100_vm8 = vcmp.lt.f32.partialorder %v94_v35, 0.5  ;;  %vm109_vm9 = vcmp.gt.f32.partialorder %v94_v35, 14.5  ;;  %vm113_vm10 = vmand %vm108_vm3, %vm112_vm1  ;;  %vm101_vm7 = vcmp.lt.f32.partialorder %v95_v55, 0.5 }
  0x11   :  { %vm488_vm11 = vmand %vm100_vm8, %vm103_vm0  ;;  %vm102_vm8 = vcmp.lt.f32.partialorder %v96_v56, 0.5 }
  0x12   :  { %vm114_vm12 = vmand %vm109_vm9, %vm112_vm1 }
  0x13   :  { %383 = vmatpush3.bf16.msra.mxu0 %v398_v26  ;;  %vm496_vm13 = vmand %vm113_vm10, %vm117_vm5 }
  0x14   :  { %384 = vmatprep.subr.bf16.mxu0 %v399_v40  ;;  %vm119_vm14 = vmand %vm114_vm12, %vm117_vm5  ;;  %vm56_vm12 = vcmp.ge.f32.partialorder %v52_v52, 0.0 }
  0x15   :  { %vm122_vm15 = vmor %vm476_vm4, %vm496_vm13  ;;  %vm110_vm4 = vcmp.gt.f32.partialorder %v95_v55, 14.5  ;;  %vm57_vm13 = vcmp.ge.f32.partialorder %v53_v54, 0.0  ;;  %v64_v61 = vsel %vm56_vm12, %v52_v52, %v60_v58 }
  0x16   :  { %vm123_vm2 = vmor %vm488_vm11, %vm119_vm14  ;;  %vm111_vm11 = vcmp.gt.f32.partialorder %v96_v56, 14.5  ;;  %v65_v62 = vsel %vm57_vm13, %v53_v54, %v61_v59 }
  0x17   :  { %385 = vmatpush3.bf16.msra.mxu0 %v399_v40  ;;  %vm326_vm3 = vmneg %vm123_vm2  ;;  %v334_v63 = vpack.c.bf16 %v65_v62, %v64_v61 }
  0x18   :  { %386 = vmatprep.subr.bf16.mxu0 %v400_v49  ;;  %vm327_vm6 = vmneg %vm122_vm15 }
  0x19   :  { %vm328_vm9 = vmpackc.low %vm326_vm3, %vm327_vm6 }
  0x1a   :  { %390 = vmatprep.mubr.msk.bf16.mxu0 %vm328_vm9, %v329_v53  ;;  %vm516_vm10 = vmand %vm101_vm7, %vm103_vm0 }
  0x1b   :  { %387 = vmatpush3.bf16.msra.mxu0 %v400_v49  ;;  %vm107_vm14 = vmand %vm102_vm8, %vm103_vm0 }
  0x1c   :  { %388 = vmatprep.subr.bf16.mxu0 %v401_v57  ;;  %vm115_vm15 = vmand %vm110_vm4, %vm112_vm1 }
  0x1d   :  { %vm116_vm2 = vmand %vm111_vm11, %vm112_vm1  ;;  %vm283_vm1 = vcmp.eq.s32.totalorder %v443_v3, 1 }
  0x1e   :  { %vm120_vm3 = vmand %vm115_vm15, %vm117_vm5 }
  0x1f   :  { %389 = vmatpush3.bf16.msra.mxu0 %v401_v57  ;;  %vm121_vm6 = vmand %vm116_vm2, %vm117_vm5  ;;  %vm282_vm5 = vcmp.eq.s32.totalorder %v443_v3, 0 }
  0x20   :  { %vm124_vm7 = vmor %vm516_vm10, %vm120_vm3 }
  0x21   :  { %vm125_vm0 = vmor %vm107_vm14, %vm121_vm6 }
  0x22   :  { %vm331_vm8 = vmneg %vm125_vm0 }
  0x23   :  { %vm332_vm9 = vmneg %vm124_vm7 }
  0x24   :  { %vm333_vm4 = vmpackc.low %vm331_vm8, %vm332_vm9 }
  0x25   :  { %391 = vmatmul.mubr.msk.bf16.vlgmr.msra.gmra.mrb[0].mxu0 %vm333_vm4, %v334_v63 }
  0xf8   :  { %v392_v1 = vpop.f32.mrb[0].mxu0 }
  0xf9   :  { %v237_v2 = vpop.f32.mrb[1].mxu0  ;;  %v246_v6 = vadd.f32 %v392_v1, %v317_v0 }
  0xfa   :  { %v238_v4 = vadd.f32 %v317_v0, %v237_v2  ;;  %v393_v5 = vpop.f32.mrb[2].mxu0 }
  0xfb   :  { %v249_v7 = vadd.f32 %v393_v5, %v317_v0  ;;  %v240_v8 = vpop.f32.mrb[3].mxu0  ;;  %v271_v15 = vmul.f32 %v246_v6, %v246_v6 }
  0xfc   :  { %v241_v9 = vadd.f32 %v317_v0, %v240_v8  ;;  %v269_v11 = vmul.f32 %v238_v4, %v238_v4 }
  0xfd   :  { %v360_v10 = vpack.c.bf16 %v249_v7, %v246_v6  ;;  %v272_v18 = vmul.f32 %v249_v7, %v249_v7 }
  0xfe   :  { %v260_v12 = vadd.f32 %v241_v9, %v238_v4  ;;  %v270_v13 = vmul.f32 %v241_v9, %v241_v9  ;;  %v355_v14 = vpack.c.bf16 %v241_v9, %v238_v4 }
  0xff   :  { %363 = vst [vmem:[%s551_s5 + $0x8] sm:$0xff] %v360_v10  }
 0x100   :  { %v261_v16 = vadd.f32 %v260_v12, %v246_v6  ;;  %v273_v17 = vadd.f32 %v270_v13, %v269_v11  ;;  %356 = vst [vmem:[%s551_s5] sm:$0xff] %v355_v14  }
 0x102   :  { %v262_v19 = vadd.f32 %v261_v16, %v249_v7  ;;  %v274_v20 = vadd.f32 %v273_v17, %v271_v15 }
 0x104   :  { %v263_v21 = vrot.slane %v262_v19, 4  ;;  %v275_v22 = vadd.f32 %v274_v20, %v272_v18 }
 0x106   :  { %v264_v23 = vadd.f32 %v263_v21, %v262_v19  ;;  %v276_v24 = vrot.slane %v275_v22, 4 }
 0x108   :  { %v265_v25 = vrot.slane %v264_v23, 2  ;;  %v277_v26 = vadd.f32 %v276_v24, %v275_v22 }
 0x10a   :  { %v266_v27 = vadd.f32 %v265_v25, %v264_v23  ;;  %v278_v28 = vrot.slane %v277_v26, 2 }
 0x10c   :  { %v279_v29 = vadd.f32 %v278_v28, %v277_v26  ;;  %v267_v30 = vrot.slane %v266_v27, 1 }
 0x10e   :  { %v280_v31 = vrot.slane %v279_v29, 1  ;;  %v268_v33 = vadd.f32 %v267_v30, %v266_v27 }
 0x110   :  { %v281_v32 = vadd.f32 %v280_v31, %v279_v29 }
 0x112   :  { %v284_v34 = vsel %vm283_vm1, %v281_v32, 0.0 }
 0x113   :  { %v285_v35 = vsel %vm282_vm5, %v268_v33, %v284_v34 }
 0x114   :  { %286 = vst [vmem:[%s552_s6] sm:$0xff] %v285_v35 }

// kernel: cae_forward.9
= control target key start
LH: loop header
LB: loop body
LE: loop exit
PB: predicated region body
PF: predicated region fallthrough
CT: control target
= control target key end

     0   :  { %v70_v0 = vlaneseq  ;;  %s691_s3 = inlined_call_operand.vmem [shape: bf16[128,128], index: 3, kind: input, shape index: {}]   ;;  %s692_s0 = inlined_call_operand.vmem [shape: bf16[32,128], index: 0, kind: input, shape index: {}]   ;;  %s693_s1 = inlined_call_operand.vmem [shape: f32[1,128], index: 1, kind: input, shape index: {}]   ;;  %s694_s2 = inlined_call_operand.vmem [shape: f32[1,128], index: 2, kind: input, shape index: {}]   ;;  %s695_s5 = inlined_call_operand.vmem [shape: bf16[128,128], index: 5, kind: input, shape index: {}]   ;;  %s696_s4 = inlined_call_operand.vmem [shape: f32[1,128], index: 4, kind: input, shape index: {}]   ;;  %s697_s6 = inlined_call_operand.vmem [shape: f32[1,128], index: 6, kind: input, shape index: {}]   ;;  %s698_s7 = inlined_call_operand.vmem [shape: f32[32,128], index: 7, kind: output, shape index: {}]  }
   0x1   :  { %v485_v1 = vld [vmem:[%s691_s3] sm:$0xff]   ;;  %v486_v2 = vld [vmem:[%s691_s3 + $0x8] sm:$0xff]   ;;  %v487_v7 = vld [vmem:[%s691_s3 + $0x10] sm:$0xff]  }
   0x2   :  { %v71_v3 = vshrl.u32 %v70_v0, 7  ;;  %445 = vmatprep.subr.bf16.mxu0 %v485_v1  ;;  %v547_v6 = vand.u32 127, %v70_v0  ;;  %v488_v10 = vld [vmem:[%s691_s3 + $0x18] sm:$0xff]   ;;  %v417_v13 = vld [vmem:[%s692_s0] sm:$0xff]   ;;  %v424_v14 = vld [vmem:[%s692_s0 + $0x8] sm:$0xff]  }
   0x3   :  { %446 = vmatpush3.bf16.msra.mxu0 %v485_v1  ;;  %v386_v15 = vld [vmem:[%s693_s1] ss:$0 sm:$0xff]  ;;  %v418_v17 = vunpack.c.l.bf16 %v417_v13  ;;  %v419_v18 = vunpack.c.h.bf16 %v417_v13  ;;  %v494_v25 = vld [vmem:[%s695_s5 + $0x8] sm:$0xff]   ;;  %v422_v33 = vunpack.c.l.bf16 %v424_v14  ;;  %v423_v34 = vunpack.c.h.bf16 %v424_v14  ;;  %v495_v39 = vld [vmem:[%s695_s5 + $0x10] sm:$0xff]  }
   0x4   :  { %v72_v4 = vadd.s32 8, %v71_v3  ;;  %v80_v5 = vcvt.s32.f32 %v71_v3  ;;  %447 = vmatprep.subr.bf16.mxu0 %v486_v2  ;;  %vm107_vm0 = vcmp.lt.s32.totalorder %v547_v6, 16  ;;  %vm116_vm1 = vcmp.ge.s32.totalorder %v547_v6, 32  ;;  %v571_v19 = vld [vmem:[%s694_s2] ss:$0 sm:$0xff]  ;;  %v490_v40 = vld [vmem:[%s691_s3 + $0x28] sm:$0xff]  }
   0x5   :  { %v566_v16 = vadd.s32 16, %v71_v3  ;;  %v573_v22 = vadd.s32 24, %v71_v3  ;;  %v493_v24 = vld [vmem:[%s695_s5] sm:$0xff]   ;;  %v43_v26 = vmul.f32 %v418_v17, %v386_v15  ;;  %v44_v27 = vmul.f32 %v419_v18, %v386_v15  ;;  %v496_v46 = vld [vmem:[%s695_s5 + $0x18] sm:$0xff]   ;;  %v491_v53 = vld [vmem:[%s691_s3 + $0x30] sm:$0xff]  }
   0x6   :  { %v81_v8 = vcvt.s32.f32 %v72_v4  ;;  %v85_v9 = vmul.f32 0.0625, %v80_v5  ;;  %v489_v28 = vld [vmem:[%s691_s3 + $0x20] sm:$0xff]   ;;  %465 = vmatprep.subr.bf16.mxu1 %v493_v24  ;;  %vm121_vm5 = vcmp.lt.s32.totalorder %v547_v6, 48  ;;  %v45_v45 = vmul.f32 %v422_v33, %v386_v15  ;;  %v492_v62 = vld [vmem:[%s691_s3 + $0x38] sm:$0xff]  }
   0x7   :  { %448 = vmatpush3.bf16.msra.mxu0 %v486_v2  ;;  %v82_v23 = vcvt.s32.f32 %v566_v16  ;;  %v83_v31 = vcvt.s32.f32 %v573_v22  ;;  %v54_v35 = vadd.f32 %v571_v19, %v43_v26  ;;  %v55_v36 = vadd.f32 %v571_v19, %v44_v27  ;;  %466 = vmatpush3.bf16.msra.mxu1 %v493_v24  ;;  %v497_v61 = vld [vmem:[%s695_s5 + $0x20] sm:$0xff]   ;;  %v498_v2 = vld [vmem:[%s695_s5 + $0x28] sm:$0xff]   ;;  %v500_v6 = vld [vmem:[%s695_s5 + $0x38] sm:$0xff]  }
   0x8   :  { %v86_v11 = vmul.f32 0.0625, %v81_v8  ;;  %v89_v12 = vfloor.f32 %v85_v9  ;;  %449 = vmatprep.subr.bf16.mxu0 %v487_v7  ;;  %467 = vmatprep.subr.bf16.mxu1 %v494_v25  ;;  %v46_v47 = vmul.f32 %v423_v34, %v386_v15  ;;  %v56_v56 = vadd.f32 %v571_v19, %v45_v45 }
   0x9   :  { %v87_v32 = vmul.f32 0.0625, %v82_v23  ;;  %v88_v38 = vmul.f32 0.0625, %v83_v31  ;;  %v62_v41 = vmul.f32 0.2, %v54_v35  ;;  %v63_v42 = vmul.f32 0.2, %v55_v36 }
   0xa   :  { %v90_v20 = vfloor.f32 %v86_v11  ;;  %v93_v21 = vmul.f32 16.0, %v89_v12  ;;  %vm58_vm6 = vcmp.ge.f32.partialorder %v54_v35, 0.0  ;;  %vm59_vm7 = vcmp.ge.f32.partialorder %v55_v36, 0.0 }
   0xb   :  { %450 = vmatpush3.bf16.msra.mxu0 %v487_v7  ;;  %468 = vmatpush3.bf16.msra.mxu1 %v494_v25  ;;  %v91_v48 = vfloor.f32 %v87_v32  ;;  %v92_v49 = vfloor.f32 %v88_v38  ;;  %v66_v50 = vsel %vm58_vm6, %v54_v35, %v62_v41  ;;  %v67_v51 = vsel %vm59_vm7, %v55_v36, %v63_v42 }
   0xc   :  { %451 = vmatprep.subr.bf16.mxu0 %v488_v10  ;;  %v94_v29 = vmul.f32 16.0, %v90_v20  ;;  %v97_v30 = vsub.f32 %v80_v5, %v93_v21  ;;  %469 = vmatprep.subr.bf16.mxu1 %v495_v39  ;;  %v400_v57 = vpack.c.bf16 %v67_v51, %v66_v50  ;;  %v57_v58 = vadd.f32 %v571_v19, %v46_v47  ;;  %v407_v20 = vld [vmem:[%s697_s6] ss:$0 sm:$0xff] }
   0xd   :  { %v95_v54 = vmul.f32 16.0, %v91_v48  ;;  %v96_v55 = vmul.f32 16.0, %v92_v49  ;;  %v64_v63 = vmul.f32 0.2, %v56_v56 }
   0xe   :  { %v98_v37 = vsub.f32 %v81_v8, %v94_v29  ;;  %vm103_vm2 = vcmp.lt.f32.partialorder %v97_v30, 0.5  ;;  %vm112_vm3 = vcmp.gt.f32.partialorder %v97_v30, 14.5  ;;  %v65_v0 = vmul.f32 0.2, %v57_v58  ;;  %v499_v8 = vld [vmem:[%s695_s5 + $0x30] sm:$0xff]  }
   0xf   :  { %452 = vmatpush3.bf16.msra.mxu0 %v488_v10  ;;  %vm596_vm4 = vmand %vm103_vm2, %vm107_vm0  ;;  %470 = vmatpush3.bf16.msra.mxu1 %v495_v39  ;;  %v99_v59 = vsub.f32 %v82_v23, %v95_v54  ;;  %v100_v60 = vsub.f32 %v83_v31, %v96_v55  ;;  %v388_v10 = vld [vmem:[%s696_s4] ss:$0 sm:$0xff] }
  0x10   :  { %453 = vmatprep.subr.bf16.mxu0 %v489_v28  ;;  %vm104_vm8 = vcmp.lt.f32.partialorder %v98_v37, 0.5  ;;  %vm113_vm9 = vcmp.gt.f32.partialorder %v98_v37, 14.5  ;;  %vm117_vm10 = vmand %vm112_vm3, %vm116_vm1  ;;  %471 = vmatprep.subr.bf16.mxu1 %v496_v46 }
  0x11   :  { %vm606_vm11 = vmand %vm104_vm8, %vm107_vm0  ;;  %vm105_vm6 = vcmp.lt.f32.partialorder %v99_v59, 0.5  ;;  %vm106_vm7 = vcmp.lt.f32.partialorder %v100_v60, 0.5 }
  0x12   :  { %vm118_vm12 = vmand %vm113_vm9, %vm116_vm1  ;;  %vm114_vm9 = vcmp.gt.f32.partialorder %v99_v59, 14.5 }
  0x13   :  { %454 = vmatpush3.bf16.msra.mxu0 %v489_v28  ;;  %vm617_vm13 = vmand %vm117_vm10, %vm121_vm5  ;;  %472 = vmatpush3.bf16.msra.mxu1 %v496_v46 }
  0x14   :  { %455 = vmatprep.subr.bf16.mxu0 %v490_v40  ;;  %vm123_vm14 = vmand %vm118_vm12, %vm121_vm5  ;;  %473 = vmatprep.subr.bf16.mxu1 %v497_v61  ;;  %vm60_vm12 = vcmp.ge.f32.partialorder %v56_v56, 0.0 }
  0x15   :  { %vm126_vm15 = vmor %vm596_vm4, %vm617_vm13  ;;  %vm61_vm13 = vcmp.ge.f32.partialorder %v57_v58, 0.0  ;;  %v68_v4 = vsel %vm60_vm12, %v56_v56, %v64_v63 }
  0x16   :  { %vm127_vm2 = vmor %vm606_vm11, %vm123_vm14  ;;  %vm115_vm11 = vcmp.gt.f32.partialorder %v100_v60, 14.5  ;;  %v69_v5 = vsel %vm61_vm13, %v57_v58, %v65_v0 }
  0x17   :  { %456 = vmatpush3.bf16.msra.mxu0 %v490_v40  ;;  %vm397_vm3 = vmneg %vm127_vm2  ;;  %474 = vmatpush3.bf16.msra.mxu1 %v497_v61  ;;  %v405_v7 = vpack.c.bf16 %v69_v5, %v68_v4 }
  0x18   :  { %457 = vmatprep.subr.bf16.mxu0 %v491_v53  ;;  %vm398_vm4 = vmneg %vm126_vm15  ;;  %475 = vmatprep.subr.bf16.mxu1 %v498_v2 }
  0x19   :  { %vm399_vm8 = vmpackc.low %vm397_vm3, %vm398_vm4 }
  0x1a   :  { %461 = vmatprep.mubr.msk.bf16.mxu0 %vm399_vm8, %v400_v57  ;;  %vm642_vm10 = vmand %vm105_vm6, %vm107_vm0 }
  0x1b   :  { %458 = vmatpush3.bf16.msra.mxu0 %v491_v53  ;;  %vm651_vm14 = vmand %vm106_vm7, %vm107_vm0  ;;  %476 = vmatpush3.bf16.msra.mxu1 %v498_v2 }
  0x1c   :  { %459 = vmatprep.subr.bf16.mxu0 %v492_v62  ;;  %vm119_vm15 = vmand %vm114_vm9, %vm116_vm1  ;;  %477 = vmatprep.subr.bf16.mxu1 %v499_v8 }
  0x1d   :  { %vm120_vm2 = vmand %vm115_vm11, %vm116_vm1 }
  0x1e   :  { %vm124_vm3 = vmand %vm119_vm15, %vm121_vm5 }
  0x1f   :  { %460 = vmatpush3.bf16.msra.mxu0 %v492_v62  ;;  %vm125_vm0 = vmand %vm120_vm2, %vm121_vm5  ;;  %478 = vmatpush3.bf16.msra.mxu1 %v499_v8 }
  0x20   :  { %vm128_vm4 = vmor %vm642_vm10, %vm124_vm3  ;;  %479 = vmatprep.subr.bf16.mxu1 %v500_v6 }
  0x21   :  { %vm129_vm6 = vmor %vm651_vm14, %vm125_vm0 }
  0x22   :  { %vm402_vm1 = vmneg %vm129_vm6 }
  0x23   :  { %vm403_vm7 = vmneg %vm128_vm4  ;;  %480 = vmatpush3.bf16.msra.mxu1 %v500_v6 }
  0x24   :  { %vm404_vm8 = vmpackc.low %vm402_vm1, %vm403_vm7 }
  0x25   :  { %462 = vmatmul.mubr.msk.bf16.vlgmr.msra.gmra.mrb[0].mxu0 %vm404_vm8, %v405_v7 }
  0xf8   :  { %v463_v9 = vpop.f32.mrb[0].mxu0 }
  0xf9   :  { %v241_v11 = vpop.f32.mrb[1].mxu0  ;;  %v250_v13 = vadd.f32 %v463_v9, %v388_v10 }
  0xfa   :  { %v464_v12 = vpop.f32.mrb[2].mxu0  ;;  %v242_v16 = vadd.f32 %v388_v10, %v241_v11 }
  0xfb   :  { %v253_v14 = vadd.f32 %v464_v12, %v388_v10  ;;  %v244_v15 = vpop.f32.mrb[3].mxu0 }
  0xfc   :  { %v245_v17 = vadd.f32 %v388_v10, %v244_v15 }
  0xfd   :  { %v257_v18 = vpack.c.bf16 %v253_v14, %v250_v13 }
  0xfe   :  { %v256_v19 = vpack.c.bf16 %v245_v17, %v242_v16 }
 0x100   :  { %481 = vmatprep.mubr.bf16.mxu1 %v256_v19 }
 0x101   :  { %482 = vmatmul.mubr.bf16.vlgmr.msra.gmra.mrb[0].mxu1 %v257_v18 }
 0x1d4   :  { %v483_v21 = vpop.f32.mrb[0].mxu1 }
 0x1d5   :  { %v372_v22 = vadd.f32 %v483_v21, %v407_v20  ;;  %v363_v23 = vpop.f32.mrb[1].mxu1 }
 0x1d6   :  { %v364_v24 = vadd.f32 %v407_v20, %v363_v23  ;;  %v484_v25 = vpop.f32.mrb[2].mxu1 }
 0x1d7   :  { %380 = vst [vmem:[%s698_s7 + $0x10] sm:$0xff] %v372_v22  ;;  %v375_v26 = vadd.f32 %v484_v25, %v407_v20  ;;  %v366_v27 = vpop.f32.mrb[3].mxu1 }
 0x1d8   :  { %378 = vst [vmem:[%s698_s7] sm:$0xff] %v364_v24  ;;  %v367_v28 = vadd.f32 %v407_v20, %v366_v27 }
 0x1d9   :  { %381 = vst [vmem:[%s698_s7 + $0x18] sm:$0xff] %v375_v26 }
 0x1da   :  { %379 = vst [vmem:[%s698_s7 + $0x8] sm:$0xff] %v367_v28 }

</bundles_post_ra>
